<compile_context>
chip_gen: v7x
topology: tpu7x:2x2x1
jax: 0.10.0
libtpu: 0.0.40
codegen_flags: <defaults>
</compile_context>

<pallas_src>
import functools

import jax
import jax.numpy as jnp
from jax.experimental import pallas as pl
from jax.experimental.pallas import tpu as pltpu


def _round_up(x, m):
    return ((x + m - 1) // m) * m


# ----------------------------------------------------------------------------
# Fused kernel: one grid step per LSTM layer.
# ----------------------------------------------------------------------------
def _fused_lstm_kernel(xp_ref, wx_ref, wh_ref, b_ref, lw_ref, lb_ref,
                       out_ref, proj_sc, seq_sc):
    layer = pl.program_id(0)
    S, Bp, Hp = seq_sc.shape

    # ---- hoisted input projection for this layer --------------------------
    @pl.when(layer == 0)
    def _():
        # Layer 0 projection (x @ Wx0 + b0) is precomputed by one big XLA matmul.
        proj_sc[...] = xp_ref[...]

    @pl.when(layer > 0)
    def _():
        # One large MXU matmul over the whole sequence produced by the previous
        # layer (kept in VMEM scratch): (S*Bp, Hp) @ (Hp, 4Hp).
        wx = wx_ref[0]                                        # (Hp, 4Hp) bf16
        seq2d = seq_sc[...].reshape(S * Bp, Hp).astype(wx.dtype)
        p = jnp.dot(seq2d, wx, preferred_element_type=jnp.float32)
        proj_sc[...] = p.reshape(S, Bp, 4 * Hp) + b_ref[0]

    # ---- recurrence: only h @ Wh per step ----------------------------------
    wh = wh_ref[0]                                            # (Hp, 4Hp) bf16

    def step(t, h, c):
        gates = proj_sc[t] + jnp.dot(
            h.astype(wh.dtype), wh, preferred_element_type=jnp.float32)
        i_g = jax.nn.sigmoid(gates[:, 0 * Hp:1 * Hp])
        f_g = jax.nn.sigmoid(gates[:, 1 * Hp:2 * Hp])
        g_g = jnp.tanh(gates[:, 2 * Hp:3 * Hp])
        o_g = jax.nn.sigmoid(gates[:, 3 * Hp:4 * Hp])
        c = f_g * c + i_g * g_g
        h = o_g * jnp.tanh(c)
        seq_sc[t] = h                     # hidden sequence for the next layer
        return h, c

    h = jnp.zeros((Bp, Hp), jnp.float32)
    c = jnp.zeros((Bp, Hp), jnp.float32)
    if S <= 16:
        # Fully unroll short sequences at trace time (static indices everywhere).
        for t in range(S):
            h, c = step(t, h, c)
    else:
        h, c = jax.lax.fori_loop(0, S, lambda t, hc: step(t, *hc), (h, c))

    # ---- fused linear head on the final hidden of this layer ---------------
    out_ref[0] = (jnp.dot(h, lw_ref[...], preferred_element_type=jnp.float32)
                  + lb_ref[...]).astype(out_ref.dtype)


def _fused_lstm_head(xp, wx_all, wh_all, b_all, lin_w, lin_b):
    """xp: (S, Bp, 4Hp) f32 layer-0 projection; weights stacked per layer."""
    S, Bp, G = xp.shape
    L, Hp, _ = wh_all.shape
    Cp = lin_w.shape[1]

    return pl.pallas_call(
        _fused_lstm_kernel,
        out_shape=jax.ShapeDtypeStruct((L, Bp, Cp), jnp.float32),
        grid_spec=pltpu.PrefetchScalarGridSpec(
            num_scalar_prefetch=0,
            grid=(L,),
            in_specs=[
                pl.BlockSpec((S, Bp, G), lambda l: (0, 0, 0)),   # xp (fetched once)
                pl.BlockSpec((1, Hp, G), lambda l: (l, 0, 0)),   # Wx per layer
                pl.BlockSpec((1, Hp, G), lambda l: (l, 0, 0)),   # Wh per layer
                pl.BlockSpec((1, 1, G), lambda l: (l, 0, 0)),    # bias per layer
                pl.BlockSpec((Hp, Cp), lambda l: (0, 0)),        # linear W
                pl.BlockSpec((1, Cp), lambda l: (0, 0)),         # linear b
            ],
            out_specs=pl.BlockSpec((1, Bp, Cp), lambda l: (l, 0, 0)),
            scratch_shapes=[
                pltpu.VMEM((S, Bp, G), jnp.float32),    # per-layer input projection
                pltpu.VMEM((S, Bp, Hp), jnp.float32),   # hidden sequence (layer->layer)
            ],
        ),
        compiler_params=pltpu.CompilerParams(
            dimension_semantics=("arbitrary",),   # layers are sequential
        ),
    )(xp, wx_all, wh_all, b_all, lin_w, lin_b)


# ----------------------------------------------------------------------------
# Parameters: PyTorch-style synthetic init + padded/stacked packing for the kernel
# ----------------------------------------------------------------------------
def init_params(key, n_features, n_classes, hidden_size, num_layers):
    """Deterministic synthetic init (PyTorch-style U(-1/sqrt(H), 1/sqrt(H)))."""
    params = {"layers": []}
    bound = 1.0 / jnp.sqrt(jnp.float32(hidden_size))
    for l in range(num_layers):
        in_dim = n_features if l == 0 else hidden_size
        key, k1, k2, k3, k4 = jax.random.split(key, 5)
        wx = jax.random.uniform(k1, (in_dim, 4 * hidden_size), jnp.float32, -bound, bound)
        wh = jax.random.uniform(k2, (hidden_size, 4 * hidden_size), jnp.float32, -bound, bound)
        b_ih = jax.random.uniform(k3, (4 * hidden_size,), jnp.float32, -bound, bound)
        b_hh = jax.random.uniform(k4, (4 * hidden_size,), jnp.float32, -bound, bound)
        params["layers"].append((wx, wh, (b_ih + b_hh).reshape(1, -1)))
    key, k5, k6 = jax.random.split(key, 3)
    params["lin_w"] = jax.random.uniform(
        k5, (hidden_size, n_classes), jnp.float32, -bound, bound)
    params["lin_b"] = jax.random.uniform(
        k6, (1, n_classes), jnp.float32, -bound, bound)
    return params


def pack_params(params, hidden_size, n_classes):
    """Pad H->mult of 128 (gate-wise), classes->mult of 128, stack layers,
    cast matmul weights to bf16.  Zero padding keeps padded lanes exactly 0."""
    H = hidden_size
    Hp = _round_up(H, 128)
    Cp = _round_up(n_classes, 128)
    L = len(params["layers"])

    def pad_gate_cols(a):  # (..., 4H) -> (..., 4Hp), per-gate zero padding
        parts = jnp.split(a, 4, axis=-1)
        widths = [(0, 0)] * (a.ndim - 1) + [(0, Hp - H)]
        return jnp.concatenate([jnp.pad(p, widths) for p in parts], axis=-1)

    wx0, _, b0 = params["layers"][0]
    wx0_p = pad_gate_cols(wx0).astype(jnp.float32)            # (F, 4Hp)
    b0_p = pad_gate_cols(b0)[0].astype(jnp.float32)           # (4Hp,)

    wx_list, wh_list, b_list = [], [], []
    for l, (wx, wh, b) in enumerate(params["layers"]):
        wh_p = jnp.pad(pad_gate_cols(wh), ((0, Hp - H), (0, 0)))
        wh_list.append(wh_p)
        if l == 0:
            # Layer 0's Wx/bias are folded into the precomputed projection.
            wx_list.append(jnp.zeros((Hp, 4 * Hp), jnp.float32))
            b_list.append(jnp.zeros((1, 4 * Hp), jnp.float32))
        else:
            wx_list.append(jnp.pad(pad_gate_cols(wx), ((0, Hp - H), (0, 0))))
            b_list.append(pad_gate_cols(b))

    return {
        "wx0": wx0_p,
        "b0": b0_p,
        "wx": jnp.stack(wx_list).astype(jnp.bfloat16),        # (L, Hp, 4Hp)
        "wh": jnp.stack(wh_list).astype(jnp.bfloat16),        # (L, Hp, 4Hp)
        "b": jnp.stack(b_list).astype(jnp.float32),           # (L, 1, 4Hp)
        "lin_w": jnp.pad(params["lin_w"],
                         ((0, Hp - H), (0, Cp - n_classes))).astype(jnp.float32),
        "lin_b": jnp.pad(params["lin_b"],
                         ((0, 0), (0, Cp - n_classes))).astype(jnp.float32),
    }


# ----------------------------------------------------------------------------
# Full forward (mirrors RecModel_lstm.forward)
# ----------------------------------------------------------------------------
@functools.partial(jax.jit, static_argnames=("n_classes",))
def rec_model_lstm_forward(x, packed, *, n_classes):
    """x: (batch, seq, n_features) [batch_first=True].
    Returns (num_layers, batch, n_classes)."""
    B, S, _ = x.shape
    Bp = _round_up(B, 8)
    x_p = jnp.pad(x.astype(jnp.float32), ((0, Bp - B), (0, 0), (0, 0)))
    # Layer-0 input projection as one large matmul; the batch_first -> time-major
    # transpose folds into this contraction (no materialized transpose in HBM).
    xp = jnp.einsum("bsf,fg->sbg", x_p, packed["wx0"]) + packed["b0"]   # (S, Bp, 4Hp)
    out_p = _fused_lstm_head(xp, packed["wx"], packed["wh"], packed["b"],
                             packed["lin_w"], packed["lin_b"])          # (L, Bp, Cp)
    return out_p[:, :B, :n_classes]


# ----------------------------------------------------------------------------
# Pure-JAX f32 reference (exact PyTorch semantics) for a sanity check
# ----------------------------------------------------------------------------
def _reference_forward(x, params):
    B, S, _ = x.shape
    inp = jnp.transpose(x, (1, 0, 2)).astype(jnp.float32)     # (S, B, F)
    finals = []
    for (wx, wh, b) in params["layers"]:
        H = wh.shape[0]
        h = jnp.zeros((B, H), jnp.float32)
        c = jnp.zeros((B, H), jnp.float32)
        hs = []
        for t in range(S):
            gates = inp[t] @ wx + h @ wh + b
            i_g = jax.nn.sigmoid(gates[:, :H])
            f_g = jax.nn.sigmoid(gates[:, H:2 * H])
            g_g = jnp.tanh(gates[:, 2 * H:3 * H])
            o_g = jax.nn.sigmoid(gates[:, 3 * H:])
            c = f_g * c + i_g * g_g
            h = o_g * jnp.tanh(c)
            hs.append(h)
        inp = jnp.stack(hs, axis=0)
        finals.append(h)
    hidden = jnp.stack(finals, axis=0)                        # (L, B, H)
    return hidden @ params["lin_w"] + params["lin_b"]         # (L, B, C)


if __name__ == "__main__":
    batch = 4
    seq = 8
    n_features = 16
    hidden_size = 32
    num_layers = 2
    n_classes = 8

    key = jax.random.PRNGKey(0)
    key, kx, kp = jax.random.split(key, 3)
    x = jax.random.normal(kx, (batch, seq, n_features), jnp.float32)
    params = init_params(kp, n_features, n_classes, hidden_size, num_layers)
    packed = pack_params(params, hidden_size, n_classes)

    out = rec_model_lstm_forward(x, packed, n_classes=n_classes)
    jax.block_until_ready(out)
    assert out.shape == (num_layers, batch, n_classes), out.shape

    # Loose tolerance: kernel uses bf16 MXU weights, reference is pure f32.
    ref = _reference_forward(x, params)
    err = float(jnp.max(jnp.abs(out - ref)))
    assert err < 8e-2, f"max abs error vs f32 reference: {err}"
    print("KERNEL_OK")
</pallas_src>

<mosaic_0001>
module attributes {stable_mosaic.version = 11 : i64} {
  func.func @_fused_lstm_kernel(%arg0: i32, %arg1: memref<8x8x512xf32, #tpu.memory_space<vmem>>, %arg2: memref<1x128x512xbf16, #tpu.memory_space<vmem>>, %arg3: memref<1x128x512xbf16, #tpu.memory_space<vmem>>, %arg4: memref<1x1x512xf32, #tpu.memory_space<vmem>>, %arg5: memref<128x128xf32, #tpu.memory_space<vmem>>, %arg6: memref<1x128xf32, #tpu.memory_space<vmem>>, %arg7: memref<1x8x128xf32, #tpu.memory_space<vmem>>, %arg8: memref<8x8x512xf32, #tpu.memory_space<vmem>>, %arg9: memref<8x8x128xf32, #tpu.memory_space<vmem>>) attributes {dimension_semantics = [#tpu.dimension_semantics<arbitrary>], iteration_bounds = array<i64: 2>, scalar_prefetch = 0 : i64, scratch_operands = 2 : i64, tpu.core_type = #tpu.core_type<tc>, window_params = [{pipeline_mode = #tpu.pipeline_mode<synchronous>, transform_indices = @transform_0, window_bounds = array<i64: 8, 8, 512>}, {transform_indices = @transform_1, window_bounds = array<i64: 1, 128, 512>}, {transform_indices = @transform_2, window_bounds = array<i64: 1, 128, 512>}, {transform_indices = @transform_3, window_bounds = array<i64: 1, 1, 512>}, {pipeline_mode = #tpu.pipeline_mode<synchronous>, transform_indices = @transform_4, window_bounds = array<i64: 128, 128>}, {pipeline_mode = #tpu.pipeline_mode<synchronous>, transform_indices = @transform_5, window_bounds = array<i64: 1, 128>}, {transform_indices = @transform_6, window_bounds = array<i64: 1, 8, 128>}]} {
    %c0_i32 = arith.constant 0 : i32
    %0 = arith.cmpi eq, %arg0, %c0_i32 : i32
    %1 = arith.extui %0 : i1 to i32
    %c0_i32_0 = arith.constant 0 : i32
    %2 = arith.cmpi ne, %1, %c0_i32_0 : i32
    scf.if %2 {
      %c0_87 = arith.constant 0 : index
      %c0_88 = arith.constant 0 : index
      %c0_89 = arith.constant 0 : index
      %282 = vector.load %arg1[%c0_87, %c0_88, %c0_89] : memref<8x8x512xf32, #tpu.memory_space<vmem>>, vector<8x8x512xf32>
      %c0_90 = arith.constant 0 : index
      %c0_91 = arith.constant 0 : index
      %c0_92 = arith.constant 0 : index
      %283 = vector.load %arg8[%c0_90, %c0_91, %c0_92] : memref<8x8x512xf32, #tpu.memory_space<vmem>>, vector<8x8x512xf32>
      tpu.vector_store %arg8[%c0_90, %c0_91, %c0_92], %282 {strides = array<i32>} : memref<8x8x512xf32, #tpu.memory_space<vmem>>, vector<8x8x512xf32>,
    } else {
    }
    %c0_i32_1 = arith.constant 0 : i32
    %3 = arith.cmpi sgt, %arg0, %c0_i32_1 : i32
    %4 = arith.extui %3 : i1 to i32
    %c0_i32_2 = arith.constant 0 : i32
    %5 = arith.cmpi ne, %4, %c0_i32_2 : i32
    scf.if %5 {
      %c0_87 = arith.constant 0 : index
      %c0_88 = arith.constant 0 : index
      %c0_89 = arith.constant 0 : index
      %282 = vector.load %arg2[%c0_87, %c0_88, %c0_89] : memref<1x128x512xbf16, #tpu.memory_space<vmem>>, vector<1x128x512xbf16>
      %283 = vector.shape_cast %282 : vector<1x128x512xbf16> to vector<128x512xbf16>
      %c0_90 = arith.constant 0 : index
      %c0_91 = arith.constant 0 : index
      %c0_92 = arith.constant 0 : index
      %284 = vector.load %arg9[%c0_90, %c0_91, %c0_92] : memref<8x8x128xf32, #tpu.memory_space<vmem>>, vector<8x8x128xf32>
      %285 = vector.shape_cast %284 : vector<8x8x128xf32> to vector<64x128xf32>
      %286 = arith.truncf %285 : vector<64x128xf32> to vector<64x128xbf16>
      %cst_93 = arith.constant dense<0.000000e+00> : vector<64x512xf32>
      %287 = tpu.matmul %286, %283, %cst_93 {dimension_numbers = #tpu.dot_dimension_numbers<[1], [0], [0], [1], [0, 0, 1, 1], [], []>} : vector<64x128xbf16>, vector<128x512xbf16>, vector<64x512xf32> -> vector<64x512xf32>
      %288 = vector.shape_cast %287 : vector<64x512xf32> to vector<8x8x512xf32>
      %c0_94 = arith.constant 0 : index
      %c0_95 = arith.constant 0 : index
      %c0_96 = arith.constant 0 : index
      %289 = vector.load %arg4[%c0_94, %c0_95, %c0_96] : memref<1x1x512xf32, #tpu.memory_space<vmem>>, vector<1x1x512xf32>
      %290 = vector.shape_cast %289 : vector<1x1x512xf32> to vector<1x512xf32>
      %291 = vector.shape_cast %290 : vector<1x512xf32> to vector<1x1x512xf32>
      %292 = vector.broadcast %291 : vector<1x1x512xf32> to vector<8x8x512xf32>
      %293 = arith.addf %288, %292 : vector<8x8x512xf32>
      %c0_97 = arith.constant 0 : index
      %c0_98 = arith.constant 0 : index
      %c0_99 = arith.constant 0 : index
      %294 = vector.load %arg8[%c0_97, %c0_98, %c0_99] : memref<8x8x512xf32, #tpu.memory_space<vmem>>, vector<8x8x512xf32>
      tpu.vector_store %arg8[%c0_97, %c0_98, %c0_99], %293 {strides = array<i32>} : memref<8x8x512xf32, #tpu.memory_space<vmem>>, vector<8x8x512xf32>,
    } else {
    }
    %c0 = arith.constant 0 : index
    %c0_3 = arith.constant 0 : index
    %c0_4 = arith.constant 0 : index
    %6 = vector.load %arg3[%c0, %c0_3, %c0_4] : memref<1x128x512xbf16, #tpu.memory_space<vmem>>, vector<1x128x512xbf16>
    %7 = vector.shape_cast %6 : vector<1x128x512xbf16> to vector<128x512xbf16>
    %cst = arith.constant 0.000000e+00 : f32
    %8 = vector.broadcast %cst : f32 to vector<8x128xf32>
    %cst_5 = arith.constant 0.000000e+00 : f32
    %9 = vector.broadcast %cst_5 : f32 to vector<8x128xf32>
    %c0_6 = arith.constant 0 : index
    %c0_7 = arith.constant 0 : index
    %c0_8 = arith.constant 0 : index
    %10 = vector.load %arg8[%c0_6, %c0_7, %c0_8] : memref<8x8x512xf32, #tpu.memory_space<vmem>>, vector<1x8x512xf32>
    %11 = vector.shape_cast %10 : vector<1x8x512xf32> to vector<8x512xf32>
    %12 = arith.truncf %8 : vector<8x128xf32> to vector<8x128xbf16>
    %cst_9 = arith.constant dense<0.000000e+00> : vector<8x512xf32>
    %13 = tpu.matmul %12, %7, %cst_9 {dimension_numbers = #tpu.dot_dimension_numbers<[1], [0], [0], [1], [0, 0, 1, 1], [], []>} : vector<8x128xbf16>, vector<128x512xbf16>, vector<8x512xf32> -> vector<8x512xf32>
    %14 = arith.addf %11, %13 : vector<8x512xf32>
    %15 = vector.extract_strided_slice %14 {offsets = [0, 0], sizes = [8, 128], strides = [1, 1]} : vector<8x512xf32> to vector<8x128xf32>
    %16 = arith.negf %15 : vector<8x128xf32>
    %17 = math.exp %16 : vector<8x128xf32>
    %cst_10 = arith.constant 1.000000e+00 : f32
    %18 = vector.broadcast %cst_10 : f32 to vector<8x128xf32>
    %19 = arith.addf %18, %17 : vector<8x128xf32>
    %20 = arith.divf %18, %19 : vector<8x128xf32>
    %21 = vector.extract_strided_slice %14 {offsets = [0, 128], sizes = [8, 128], strides = [1, 1]} : vector<8x512xf32> to vector<8x128xf32>
    %22 = arith.negf %21 : vector<8x128xf32>
    %23 = math.exp %22 : vector<8x128xf32>
    %cst_11 = arith.constant 1.000000e+00 : f32
    %24 = vector.broadcast %cst_11 : f32 to vector<8x128xf32>
    %25 = arith.addf %24, %23 : vector<8x128xf32>
    %26 = arith.divf %24, %25 : vector<8x128xf32>
    %27 = vector.extract_strided_slice %14 {offsets = [0, 256], sizes = [8, 128], strides = [1, 1]} : vector<8x512xf32> to vector<8x128xf32>
    %28 = math.tanh %27 : vector<8x128xf32>
    %29 = vector.extract_strided_slice %14 {offsets = [0, 384], sizes = [8, 128], strides = [1, 1]} : vector<8x512xf32> to vector<8x128xf32>
    %30 = arith.negf %29 : vector<8x128xf32>
    %31 = math.exp %30 : vector<8x128xf32>
    %cst_12 = arith.constant 1.000000e+00 : f32
    %32 = vector.broadcast %cst_12 : f32 to vector<8x128xf32>
    %33 = arith.addf %32, %31 : vector<8x128xf32>
    %34 = arith.divf %32, %33 : vector<8x128xf32>
    %35 = arith.mulf %26, %9 : vector<8x128xf32>
    %36 = arith.mulf %20, %28 : vector<8x128xf32>
    %37 = arith.addf %35, %36 : vector<8x128xf32>
    %38 = math.tanh %37 : vector<8x128xf32>
    %39 = arith.mulf %34, %38 : vector<8x128xf32>
    %c0_13 = arith.constant 0 : index
    %c0_14 = arith.constant 0 : index
    %c0_15 = arith.constant 0 : index
    %40 = vector.load %arg9[%c0_13, %c0_14, %c0_15] : memref<8x8x128xf32, #tpu.memory_space<vmem>>, vector<1x8x128xf32>
    %41 = vector.shape_cast %40 : vector<1x8x128xf32> to vector<8x128xf32>
    %42 = vector.shape_cast %39 : vector<8x128xf32> to vector<1x8x128xf32>
    tpu.vector_store %arg9[%c0_13, %c0_14, %c0_15], %42 {strides = array<i32>} : memref<8x8x128xf32, #tpu.memory_space<vmem>>, vector<1x8x128xf32>,
    %c1 = arith.constant 1 : index
    %c0_16 = arith.constant 0 : index
    %c0_17 = arith.constant 0 : index
    %43 = vector.load %arg8[%c1, %c0_16, %c0_17] : memref<8x8x512xf32, #tpu.memory_space<vmem>>, vector<1x8x512xf32>
    %44 = vector.shape_cast %43 : vector<1x8x512xf32> to vector<8x512xf32>
    %45 = arith.truncf %39 : vector<8x128xf32> to vector<8x128xbf16>
    %cst_18 = arith.constant dense<0.000000e+00> : vector<8x512xf32>
    %46 = tpu.matmul %45, %7, %cst_18 {dimension_numbers = #tpu.dot_dimension_numbers<[1], [0], [0], [1], [0, 0, 1, 1], [], []>} : vector<8x128xbf16>, vector<128x512xbf16>, vector<8x512xf32> -> vector<8x512xf32>
    %47 = arith.addf %44, %46 : vector<8x512xf32>
    %48 = vector.extract_strided_slice %47 {offsets = [0, 0], sizes = [8, 128], strides = [1, 1]} : vector<8x512xf32> to vector<8x128xf32>
    %49 = arith.negf %48 : vector<8x128xf32>
    %50 = math.exp %49 : vector<8x128xf32>
    %cst_19 = arith.constant 1.000000e+00 : f32
    %51 = vector.broadcast %cst_19 : f32 to vector<8x128xf32>
    %52 = arith.addf %51, %50 : vector<8x128xf32>
    %53 = arith.divf %51, %52 : vector<8x128xf32>
    %54 = vector.extract_strided_slice %47 {offsets = [0, 128], sizes = [8, 128], strides = [1, 1]} : vector<8x512xf32> to vector<8x128xf32>
    %55 = arith.negf %54 : vector<8x128xf32>
    %56 = math.exp %55 : vector<8x128xf32>
    %cst_20 = arith.constant 1.000000e+00 : f32
    %57 = vector.broadcast %cst_20 : f32 to vector<8x128xf32>
    %58 = arith.addf %57, %56 : vector<8x128xf32>
    %59 = arith.divf %57, %58 : vector<8x128xf32>
    %60 = vector.extract_strided_slice %47 {offsets = [0, 256], sizes = [8, 128], strides = [1, 1]} : vector<8x512xf32> to vector<8x128xf32>
    %61 = math.tanh %60 : vector<8x128xf32>
    %62 = vector.extract_strided_slice %47 {offsets = [0, 384], sizes = [8, 128], strides = [1, 1]} : vector<8x512xf32> to vector<8x128xf32>
    %63 = arith.negf %62 : vector<8x128xf32>
    %64 = math.exp %63 : vector<8x128xf32>
    %cst_21 = arith.constant 1.000000e+00 : f32
    %65 = vector.broadcast %cst_21 : f32 to vector<8x128xf32>
    %66 = arith.addf %65, %64 : vector<8x128xf32>
    %67 = arith.divf %65, %66 : vector<8x128xf32>
    %68 = arith.mulf %59, %37 : vector<8x128xf32>
    %69 = arith.mulf %53, %61 : vector<8x128xf32>
    %70 = arith.addf %68, %69 : vector<8x128xf32>
    %71 = math.tanh %70 : vector<8x128xf32>
    %72 = arith.mulf %67, %71 : vector<8x128xf32>
    %c1_22 = arith.constant 1 : index
    %c0_23 = arith.constant 0 : index
    %c0_24 = arith.constant 0 : index
    %73 = vector.load %arg9[%c1_22, %c0_23, %c0_24] : memref<8x8x128xf32, #tpu.memory_space<vmem>>, vector<1x8x128xf32>
    %74 = vector.shape_cast %73 : vector<1x8x128xf32> to vector<8x128xf32>
    %75 = vector.shape_cast %72 : vector<8x128xf32> to vector<1x8x128xf32>
    tpu.vector_store %arg9[%c1_22, %c0_23, %c0_24], %75 {strides = array<i32>} : memref<8x8x128xf32, #tpu.memory_space<vmem>>, vector<1x8x128xf32>,
    %c2 = arith.constant 2 : index
    %c0_25 = arith.constant 0 : index
    %c0_26 = arith.constant 0 : index
    %76 = vector.load %arg8[%c2, %c0_25, %c0_26] : memref<8x8x512xf32, #tpu.memory_space<vmem>>, vector<1x8x512xf32>
    %77 = vector.shape_cast %76 : vector<1x8x512xf32> to vector<8x512xf32>
    %78 = arith.truncf %72 : vector<8x128xf32> to vector<8x128xbf16>
    %cst_27 = arith.constant dense<0.000000e+00> : vector<8x512xf32>
    %79 = tpu.matmul %78, %7, %cst_27 {dimension_numbers = #tpu.dot_dimension_numbers<[1], [0], [0], [1], [0, 0, 1, 1], [], []>} : vector<8x128xbf16>, vector<128x512xbf16>, vector<8x512xf32> -> vector<8x512xf32>
    %80 = arith.addf %77, %79 : vector<8x512xf32>
    %81 = vector.extract_strided_slice %80 {offsets = [0, 0], sizes = [8, 128], strides = [1, 1]} : vector<8x512xf32> to vector<8x128xf32>
    %82 = arith.negf %81 : vector<8x128xf32>
    %83 = math.exp %82 : vector<8x128xf32>
    %cst_28 = arith.constant 1.000000e+00 : f32
    %84 = vector.broadcast %cst_28 : f32 to vector<8x128xf32>
    %85 = arith.addf %84, %83 : vector<8x128xf32>
    %86 = arith.divf %84, %85 : vector<8x128xf32>
    %87 = vector.extract_strided_slice %80 {offsets = [0, 128], sizes = [8, 128], strides = [1, 1]} : vector<8x512xf32> to vector<8x128xf32>
    %88 = arith.negf %87 : vector<8x128xf32>
    %89 = math.exp %88 : vector<8x128xf32>
    %cst_29 = arith.constant 1.000000e+00 : f32
    %90 = vector.broadcast %cst_29 : f32 to vector<8x128xf32>
    %91 = arith.addf %90, %89 : vector<8x128xf32>
    %92 = arith.divf %90, %91 : vector<8x128xf32>
    %93 = vector.extract_strided_slice %80 {offsets = [0, 256], sizes = [8, 128], strides = [1, 1]} : vector<8x512xf32> to vector<8x128xf32>
    %94 = math.tanh %93 : vector<8x128xf32>
    %95 = vector.extract_strided_slice %80 {offsets = [0, 384], sizes = [8, 128], strides = [1, 1]} : vector<8x512xf32> to vector<8x128xf32>
    %96 = arith.negf %95 : vector<8x128xf32>
    %97 = math.exp %96 : vector<8x128xf32>
    %cst_30 = arith.constant 1.000000e+00 : f32
    %98 = vector.broadcast %cst_30 : f32 to vector<8x128xf32>
    %99 = arith.addf %98, %97 : vector<8x128xf32>
    %100 = arith.divf %98, %99 : vector<8x128xf32>
    %101 = arith.mulf %92, %70 : vector<8x128xf32>
    %102 = arith.mulf %86, %94 : vector<8x128xf32>
    %103 = arith.addf %101, %102 : vector<8x128xf32>
    %104 = math.tanh %103 : vector<8x128xf32>
    %105 = arith.mulf %100, %104 : vector<8x128xf32>
    %c2_31 = arith.constant 2 : index
    %c0_32 = arith.constant 0 : index
    %c0_33 = arith.constant 0 : index
    %106 = vector.load %arg9[%c2_31, %c0_32, %c0_33] : memref<8x8x128xf32, #tpu.memory_space<vmem>>, vector<1x8x128xf32>
    %107 = vector.shape_cast %106 : vector<1x8x128xf32> to vector<8x128xf32>
    %108 = vector.shape_cast %105 : vector<8x128xf32> to vector<1x8x128xf32>
    tpu.vector_store %arg9[%c2_31, %c0_32, %c0_33], %108 {strides = array<i32>} : memref<8x8x128xf32, #tpu.memory_space<vmem>>, vector<1x8x128xf32>,
    %c3 = arith.constant 3 : index
    %c0_34 = arith.constant 0 : index
    %c0_35 = arith.constant 0 : index
    %109 = vector.load %arg8[%c3, %c0_34, %c0_35] : memref<8x8x512xf32, #tpu.memory_space<vmem>>, vector<1x8x512xf32>
    %110 = vector.shape_cast %109 : vector<1x8x512xf32> to vector<8x512xf32>
    %111 = arith.truncf %105 : vector<8x128xf32> to vector<8x128xbf16>
    %cst_36 = arith.constant dense<0.000000e+00> : vector<8x512xf32>
    %112 = tpu.matmul %111, %7, %cst_36 {dimension_numbers = #tpu.dot_dimension_numbers<[1], [0], [0], [1], [0, 0, 1, 1], [], []>} : vector<8x128xbf16>, vector<128x512xbf16>, vector<8x512xf32> -> vector<8x512xf32>
    %113 = arith.addf %110, %112 : vector<8x512xf32>
    %114 = vector.extract_strided_slice %113 {offsets = [0, 0], sizes = [8, 128], strides = [1, 1]} : vector<8x512xf32> to vector<8x128xf32>
    %115 = arith.negf %114 : vector<8x128xf32>
    %116 = math.exp %115 : vector<8x128xf32>
    %cst_37 = arith.constant 1.000000e+00 : f32
    %117 = vector.broadcast %cst_37 : f32 to vector<8x128xf32>
    %118 = arith.addf %117, %116 : vector<8x128xf32>
    %119 = arith.divf %117, %118 : vector<8x128xf32>
    %120 = vector.extract_strided_slice %113 {offsets = [0, 128], sizes = [8, 128], strides = [1, 1]} : vector<8x512xf32> to vector<8x128xf32>
    %121 = arith.negf %120 : vector<8x128xf32>
    %122 = math.exp %121 : vector<8x128xf32>
    %cst_38 = arith.constant 1.000000e+00 : f32
    %123 = vector.broadcast %cst_38 : f32 to vector<8x128xf32>
    %124 = arith.addf %123, %122 : vector<8x128xf32>
    %125 = arith.divf %123, %124 : vector<8x128xf32>
    %126 = vector.extract_strided_slice %113 {offsets = [0, 256], sizes = [8, 128], strides = [1, 1]} : vector<8x512xf32> to vector<8x128xf32>
    %127 = math.tanh %126 : vector<8x128xf32>
    %128 = vector.extract_strided_slice %113 {offsets = [0, 384], sizes = [8, 128], strides = [1, 1]} : vector<8x512xf32> to vector<8x128xf32>
    %129 = arith.negf %128 : vector<8x128xf32>
    %130 = math.exp %129 : vector<8x128xf32>
    %cst_39 = arith.constant 1.000000e+00 : f32
    %131 = vector.broadcast %cst_39 : f32 to vector<8x128xf32>
    %132 = arith.addf %131, %130 : vector<8x128xf32>
    %133 = arith.divf %131, %132 : vector<8x128xf32>
    %134 = arith.mulf %125, %103 : vector<8x128xf32>
    %135 = arith.mulf %119, %127 : vector<8x128xf32>
    %136 = arith.addf %134, %135 : vector<8x128xf32>
    %137 = math.tanh %136 : vector<8x128xf32>
    %138 = arith.mulf %133, %137 : vector<8x128xf32>
    %c3_40 = arith.constant 3 : index
    %c0_41 = arith.constant 0 : index
    %c0_42 = arith.constant 0 : index
    %139 = vector.load %arg9[%c3_40, %c0_41, %c0_42] : memref<8x8x128xf32, #tpu.memory_space<vmem>>, vector<1x8x128xf32>
    %140 = vector.shape_cast %139 : vector<1x8x128xf32> to vector<8x128xf32>
    %141 = vector.shape_cast %138 : vector<8x128xf32> to vector<1x8x128xf32>
    tpu.vector_store %arg9[%c3_40, %c0_41, %c0_42], %141 {strides = array<i32>} : memref<8x8x128xf32, #tpu.memory_space<vmem>>, vector<1x8x128xf32>,
    %c4 = arith.constant 4 : index
    %c0_43 = arith.constant 0 : index
    %c0_44 = arith.constant 0 : index
    %142 = vector.load %arg8[%c4, %c0_43, %c0_44] : memref<8x8x512xf32, #tpu.memory_space<vmem>>, vector<1x8x512xf32>
    %143 = vector.shape_cast %142 : vector<1x8x512xf32> to vector<8x512xf32>
    %144 = arith.truncf %138 : vector<8x128xf32> to vector<8x128xbf16>
    %cst_45 = arith.constant dense<0.000000e+00> : vector<8x512xf32>
    %145 = tpu.matmul %144, %7, %cst_45 {dimension_numbers = #tpu.dot_dimension_numbers<[1], [0], [0], [1], [0, 0, 1, 1], [], []>} : vector<8x128xbf16>, vector<128x512xbf16>, vector<8x512xf32> -> vector<8x512xf32>
    %146 = arith.addf %143, %145 : vector<8x512xf32>
    %147 = vector.extract_strided_slice %146 {offsets = [0, 0], sizes = [8, 128], strides = [1, 1]} : vector<8x512xf32> to vector<8x128xf32>
    %148 = arith.negf %147 : vector<8x128xf32>
    %149 = math.exp %148 : vector<8x128xf32>
    %cst_46 = arith.constant 1.000000e+00 : f32
    %150 = vector.broadcast %cst_46 : f32 to vector<8x128xf32>
    %151 = arith.addf %150, %149 : vector<8x128xf32>
    %152 = arith.divf %150, %151 : vector<8x128xf32>
    %153 = vector.extract_strided_slice %146 {offsets = [0, 128], sizes = [8, 128], strides = [1, 1]} : vector<8x512xf32> to vector<8x128xf32>
    %154 = arith.negf %153 : vector<8x128xf32>
    %155 = math.exp %154 : vector<8x128xf32>
    %cst_47 = arith.constant 1.000000e+00 : f32
    %156 = vector.broadcast %cst_47 : f32 to vector<8x128xf32>
    %157 = arith.addf %156, %155 : vector<8x128xf32>
    %158 = arith.divf %156, %157 : vector<8x128xf32>
    %159 = vector.extract_strided_slice %146 {offsets = [0, 256], sizes = [8, 128], strides = [1, 1]} : vector<8x512xf32> to vector<8x128xf32>
    %160 = math.tanh %159 : vector<8x128xf32>
    %161 = vector.extract_strided_slice %146 {offsets = [0, 384], sizes = [8, 128], strides = [1, 1]} : vector<8x512xf32> to vector<8x128xf32>
    %162 = arith.negf %161 : vector<8x128xf32>
    %163 = math.exp %162 : vector<8x128xf32>
    %cst_48 = arith.constant 1.000000e+00 : f32
    %164 = vector.broadcast %cst_48 : f32 to vector<8x128xf32>
    %165 = arith.addf %164, %163 : vector<8x128xf32>
    %166 = arith.divf %164, %165 : vector<8x128xf32>
    %167 = arith.mulf %158, %136 : vector<8x128xf32>
    %168 = arith.mulf %152, %160 : vector<8x128xf32>
    %169 = arith.addf %167, %168 : vector<8x128xf32>
    %170 = math.tanh %169 : vector<8x128xf32>
    %171 = arith.mulf %166, %170 : vector<8x128xf32>
    %c4_49 = arith.constant 4 : index
    %c0_50 = arith.constant 0 : index
    %c0_51 = arith.constant 0 : index
    %172 = vector.load %arg9[%c4_49, %c0_50, %c0_51] : memref<8x8x128xf32, #tpu.memory_space<vmem>>, vector<1x8x128xf32>
    %173 = vector.shape_cast %172 : vector<1x8x128xf32> to vector<8x128xf32>
    %174 = vector.shape_cast %171 : vector<8x128xf32> to vector<1x8x128xf32>
    tpu.vector_store %arg9[%c4_49, %c0_50, %c0_51], %174 {strides = array<i32>} : memref<8x8x128xf32, #tpu.memory_space<vmem>>, vector<1x8x128xf32>,
    %c5 = arith.constant 5 : index
    %c0_52 = arith.constant 0 : index
    %c0_53 = arith.constant 0 : index
    %175 = vector.load %arg8[%c5, %c0_52, %c0_53] : memref<8x8x512xf32, #tpu.memory_space<vmem>>, vector<1x8x512xf32>
    %176 = vector.shape_cast %175 : vector<1x8x512xf32> to vector<8x512xf32>
    %177 = arith.truncf %171 : vector<8x128xf32> to vector<8x128xbf16>
    %cst_54 = arith.constant dense<0.000000e+00> : vector<8x512xf32>
    %178 = tpu.matmul %177, %7, %cst_54 {dimension_numbers = #tpu.dot_dimension_numbers<[1], [0], [0], [1], [0, 0, 1, 1], [], []>} : vector<8x128xbf16>, vector<128x512xbf16>, vector<8x512xf32> -> vector<8x512xf32>
    %179 = arith.addf %176, %178 : vector<8x512xf32>
    %180 = vector.extract_strided_slice %179 {offsets = [0, 0], sizes = [8, 128], strides = [1, 1]} : vector<8x512xf32> to vector<8x128xf32>
    %181 = arith.negf %180 : vector<8x128xf32>
    %182 = math.exp %181 : vector<8x128xf32>
    %cst_55 = arith.constant 1.000000e+00 : f32
    %183 = vector.broadcast %cst_55 : f32 to vector<8x128xf32>
    %184 = arith.addf %183, %182 : vector<8x128xf32>
    %185 = arith.divf %183, %184 : vector<8x128xf32>
    %186 = vector.extract_strided_slice %179 {offsets = [0, 128], sizes = [8, 128], strides = [1, 1]} : vector<8x512xf32> to vector<8x128xf32>
    %187 = arith.negf %186 : vector<8x128xf32>
    %188 = math.exp %187 : vector<8x128xf32>
    %cst_56 = arith.constant 1.000000e+00 : f32
    %189 = vector.broadcast %cst_56 : f32 to vector<8x128xf32>
    %190 = arith.addf %189, %188 : vector<8x128xf32>
    %191 = arith.divf %189, %190 : vector<8x128xf32>
    %192 = vector.extract_strided_slice %179 {offsets = [0, 256], sizes = [8, 128], strides = [1, 1]} : vector<8x512xf32> to vector<8x128xf32>
    %193 = math.tanh %192 : vector<8x128xf32>
    %194 = vector.extract_strided_slice %179 {offsets = [0, 384], sizes = [8, 128], strides = [1, 1]} : vector<8x512xf32> to vector<8x128xf32>
    %195 = arith.negf %194 : vector<8x128xf32>
    %196 = math.exp %195 : vector<8x128xf32>
    %cst_57 = arith.constant 1.000000e+00 : f32
    %197 = vector.broadcast %cst_57 : f32 to vector<8x128xf32>
    %198 = arith.addf %197, %196 : vector<8x128xf32>
    %199 = arith.divf %197, %198 : vector<8x128xf32>
    %200 = arith.mulf %191, %169 : vector<8x128xf32>
    %201 = arith.mulf %185, %193 : vector<8x128xf32>
    %202 = arith.addf %200, %201 : vector<8x128xf32>
    %203 = math.tanh %202 : vector<8x128xf32>
    %204 = arith.mulf %199, %203 : vector<8x128xf32>
    %c5_58 = arith.constant 5 : index
    %c0_59 = arith.constant 0 : index
    %c0_60 = arith.constant 0 : index
    %205 = vector.load %arg9[%c5_58, %c0_59, %c0_60] : memref<8x8x128xf32, #tpu.memory_space<vmem>>, vector<1x8x128xf32>
    %206 = vector.shape_cast %205 : vector<1x8x128xf32> to vector<8x128xf32>
    %207 = vector.shape_cast %204 : vector<8x128xf32> to vector<1x8x128xf32>
    tpu.vector_store %arg9[%c5_58, %c0_59, %c0_60], %207 {strides = array<i32>} : memref<8x8x128xf32, #tpu.memory_space<vmem>>, vector<1x8x128xf32>,
    %c6 = arith.constant 6 : index
    %c0_61 = arith.constant 0 : index
    %c0_62 = arith.constant 0 : index
    %208 = vector.load %arg8[%c6, %c0_61, %c0_62] : memref<8x8x512xf32, #tpu.memory_space<vmem>>, vector<1x8x512xf32>
    %209 = vector.shape_cast %208 : vector<1x8x512xf32> to vector<8x512xf32>
    %210 = arith.truncf %204 : vector<8x128xf32> to vector<8x128xbf16>
    %cst_63 = arith.constant dense<0.000000e+00> : vector<8x512xf32>
    %211 = tpu.matmul %210, %7, %cst_63 {dimension_numbers = #tpu.dot_dimension_numbers<[1], [0], [0], [1], [0, 0, 1, 1], [], []>} : vector<8x128xbf16>, vector<128x512xbf16>, vector<8x512xf32> -> vector<8x512xf32>
    %212 = arith.addf %209, %211 : vector<8x512xf32>
    %213 = vector.extract_strided_slice %212 {offsets = [0, 0], sizes = [8, 128], strides = [1, 1]} : vector<8x512xf32> to vector<8x128xf32>
    %214 = arith.negf %213 : vector<8x128xf32>
    %215 = math.exp %214 : vector<8x128xf32>
    %cst_64 = arith.constant 1.000000e+00 : f32
    %216 = vector.broadcast %cst_64 : f32 to vector<8x128xf32>
    %217 = arith.addf %216, %215 : vector<8x128xf32>
    %218 = arith.divf %216, %217 : vector<8x128xf32>
    %219 = vector.extract_strided_slice %212 {offsets = [0, 128], sizes = [8, 128], strides = [1, 1]} : vector<8x512xf32> to vector<8x128xf32>
    %220 = arith.negf %219 : vector<8x128xf32>
    %221 = math.exp %220 : vector<8x128xf32>
    %cst_65 = arith.constant 1.000000e+00 : f32
    %222 = vector.broadcast %cst_65 : f32 to vector<8x128xf32>
    %223 = arith.addf %222, %221 : vector<8x128xf32>
    %224 = arith.divf %222, %223 : vector<8x128xf32>
    %225 = vector.extract_strided_slice %212 {offsets = [0, 256], sizes = [8, 128], strides = [1, 1]} : vector<8x512xf32> to vector<8x128xf32>
    %226 = math.tanh %225 : vector<8x128xf32>
    %227 = vector.extract_strided_slice %212 {offsets = [0, 384], sizes = [8, 128], strides = [1, 1]} : vector<8x512xf32> to vector<8x128xf32>
    %228 = arith.negf %227 : vector<8x128xf32>
    %229 = math.exp %228 : vector<8x128xf32>
    %cst_66 = arith.constant 1.000000e+00 : f32
    %230 = vector.broadcast %cst_66 : f32 to vector<8x128xf32>
    %231 = arith.addf %230, %229 : vector<8x128xf32>
    %232 = arith.divf %230, %231 : vector<8x128xf32>
    %233 = arith.mulf %224, %202 : vector<8x128xf32>
    %234 = arith.mulf %218, %226 : vector<8x128xf32>
    %235 = arith.addf %233, %234 : vector<8x128xf32>
    %236 = math.tanh %235 : vector<8x128xf32>
    %237 = arith.mulf %232, %236 : vector<8x128xf32>
    %c6_67 = arith.constant 6 : index
    %c0_68 = arith.constant 0 : index
    %c0_69 = arith.constant 0 : index
    %238 = vector.load %arg9[%c6_67, %c0_68, %c0_69] : memref<8x8x128xf32, #tpu.memory_space<vmem>>, vector<1x8x128xf32>
    %239 = vector.shape_cast %238 : vector<1x8x128xf32> to vector<8x128xf32>
    %240 = vector.shape_cast %237 : vector<8x128xf32> to vector<1x8x128xf32>
    tpu.vector_store %arg9[%c6_67, %c0_68, %c0_69], %240 {strides = array<i32>} : memref<8x8x128xf32, #tpu.memory_space<vmem>>, vector<1x8x128xf32>,
    %c7 = arith.constant 7 : index
    %c0_70 = arith.constant 0 : index
    %c0_71 = arith.constant 0 : index
    %241 = vector.load %arg8[%c7, %c0_70, %c0_71] : memref<8x8x512xf32, #tpu.memory_space<vmem>>, vector<1x8x512xf32>
    %242 = vector.shape_cast %241 : vector<1x8x512xf32> to vector<8x512xf32>
    %243 = arith.truncf %237 : vector<8x128xf32> to vector<8x128xbf16>
    %cst_72 = arith.constant dense<0.000000e+00> : vector<8x512xf32>
    %244 = tpu.matmul %243, %7, %cst_72 {dimension_numbers = #tpu.dot_dimension_numbers<[1], [0], [0], [1], [0, 0, 1, 1], [], []>} : vector<8x128xbf16>, vector<128x512xbf16>, vector<8x512xf32> -> vector<8x512xf32>
    %245 = arith.addf %242, %244 : vector<8x512xf32>
    %246 = vector.extract_strided_slice %245 {offsets = [0, 0], sizes = [8, 128], strides = [1, 1]} : vector<8x512xf32> to vector<8x128xf32>
    %247 = arith.negf %246 : vector<8x128xf32>
    %248 = math.exp %247 : vector<8x128xf32>
    %cst_73 = arith.constant 1.000000e+00 : f32
    %249 = vector.broadcast %cst_73 : f32 to vector<8x128xf32>
    %250 = arith.addf %249, %248 : vector<8x128xf32>
    %251 = arith.divf %249, %250 : vector<8x128xf32>
    %252 = vector.extract_strided_slice %245 {offsets = [0, 128], sizes = [8, 128], strides = [1, 1]} : vector<8x512xf32> to vector<8x128xf32>
    %253 = arith.negf %252 : vector<8x128xf32>
    %254 = math.exp %253 : vector<8x128xf32>
    %cst_74 = arith.constant 1.000000e+00 : f32
    %255 = vector.broadcast %cst_74 : f32 to vector<8x128xf32>
    %256 = arith.addf %255, %254 : vector<8x128xf32>
    %257 = arith.divf %255, %256 : vector<8x128xf32>
    %258 = vector.extract_strided_slice %245 {offsets = [0, 256], sizes = [8, 128], strides = [1, 1]} : vector<8x512xf32> to vector<8x128xf32>
    %259 = math.tanh %258 : vector<8x128xf32>
    %260 = vector.extract_strided_slice %245 {offsets = [0, 384], sizes = [8, 128], strides = [1, 1]} : vector<8x512xf32> to vector<8x128xf32>
    %261 = arith.negf %260 : vector<8x128xf32>
    %262 = math.exp %261 : vector<8x128xf32>
    %cst_75 = arith.constant 1.000000e+00 : f32
    %263 = vector.broadcast %cst_75 : f32 to vector<8x128xf32>
    %264 = arith.addf %263, %262 : vector<8x128xf32>
    %265 = arith.divf %263, %264 : vector<8x128xf32>
    %266 = arith.mulf %257, %235 : vector<8x128xf32>
    %267 = arith.mulf %251, %259 : vector<8x128xf32>
    %268 = arith.addf %266, %267 : vector<8x128xf32>
    %269 = math.tanh %268 : vector<8x128xf32>
    %270 = arith.mulf %265, %269 : vector<8x128xf32>
    %c7_76 = arith.constant 7 : index
    %c0_77 = arith.constant 0 : index
    %c0_78 = arith.constant 0 : index
    %271 = vector.load %arg9[%c7_76, %c0_77, %c0_78] : memref<8x8x128xf32, #tpu.memory_space<vmem>>, vector<1x8x128xf32>
    %272 = vector.shape_cast %271 : vector<1x8x128xf32> to vector<8x128xf32>
    %273 = vector.shape_cast %270 : vector<8x128xf32> to vector<1x8x128xf32>
    tpu.vector_store %arg9[%c7_76, %c0_77, %c0_78], %273 {strides = array<i32>} : memref<8x8x128xf32, #tpu.memory_space<vmem>>, vector<1x8x128xf32>,
    %c0_79 = arith.constant 0 : index
    %c0_80 = arith.constant 0 : index
    %274 = vector.load %arg5[%c0_79, %c0_80] : memref<128x128xf32, #tpu.memory_space<vmem>>, vector<128x128xf32>
    %cst_81 = arith.constant dense<0.000000e+00> : vector<8x128xf32>
    %275 = tpu.matmul %270, %274, %cst_81 {dimension_numbers = #tpu.dot_dimension_numbers<[1], [0], [0], [1], [0, 0, 1, 1], [], []>} : vector<8x128xf32>, vector<128x128xf32>, vector<8x128xf32> -> vector<8x128xf32>
    %c0_82 = arith.constant 0 : index
    %c0_83 = arith.constant 0 : index
    %276 = vector.load %arg6[%c0_82, %c0_83] : memref<1x128xf32, #tpu.memory_space<vmem>>, vector<1x128xf32>
    %277 = vector.broadcast %276 : vector<1x128xf32> to vector<8x128xf32>
    %278 = arith.addf %275, %277 : vector<8x128xf32>
    %c0_84 = arith.constant 0 : index
    %c0_85 = arith.constant 0 : index
    %c0_86 = arith.constant 0 : index
    %279 = vector.load %arg7[%c0_84, %c0_85, %c0_86] : memref<1x8x128xf32, #tpu.memory_space<vmem>>, vector<1x8x128xf32>
    %280 = vector.shape_cast %279 : vector<1x8x128xf32> to vector<8x128xf32>
    %281 = vector.shape_cast %278 : vector<8x128xf32> to vector<1x8x128xf32>
    tpu.vector_store %arg7[%c0_84, %c0_85, %c0_86], %281 {strides = array<i32>} : memref<1x8x128xf32, #tpu.memory_space<vmem>>, vector<1x8x128xf32>,
    return
  }
  func.func @transform_0(%arg0: i32) -> (i32, i32, i32) {
    %c0_i32 = arith.constant 0 : i32
    %c0_i32_0 = arith.constant 0 : i32
    %c0_i32_1 = arith.constant 0 : i32
    %c0_i32_2 = arith.constant 0 : i32
    return %c0_i32, %c0_i32_0, %c0_i32_1 : i32, i32, i32
  }
  func.func @transform_1(%arg0: i32) -> (i32, i32, i32) {
    %c0_i32 = arith.constant 0 : i32
    %c0_i32_0 = arith.constant 0 : i32
    %c0_i32_1 = arith.constant 0 : i32
    return %arg0, %c0_i32, %c0_i32_0 : i32, i32, i32
  }
  func.func @transform_2(%arg0: i32) -> (i32, i32, i32) {
    %c0_i32 = arith.constant 0 : i32
    %c0_i32_0 = arith.constant 0 : i32
    %c0_i32_1 = arith.constant 0 : i32
    return %arg0, %c0_i32, %c0_i32_0 : i32, i32, i32
  }
  func.func @transform_3(%arg0: i32) -> (i32, i32, i32) {
    %c0_i32 = arith.constant 0 : i32
    %c0_i32_0 = arith.constant 0 : i32
    %c0_i32_1 = arith.constant 0 : i32
    return %arg0, %c0_i32, %c0_i32_0 : i32, i32, i32
  }
  func.func @transform_4(%arg0: i32) -> (i32, i32) {
    %c0_i32 = arith.constant 0 : i32
    %c0_i32_0 = arith.constant 0 : i32
    %c0_i32_1 = arith.constant 0 : i32
    return %c0_i32, %c0_i32_0 : i32, i32
  }
  func.func @transform_5(%arg0: i32) -> (i32, i32) {
    %c0_i32 = arith.constant 0 : i32
    %c0_i32_0 = arith.constant 0 : i32
    %c0_i32_1 = arith.constant 0 : i32
    return %c0_i32, %c0_i32_0 : i32, i32
  }
  func.func @transform_6(%arg0: i32) -> (i32, i32, i32) {
    %c0_i32 = arith.constant 0 : i32
    %c0_i32_0 = arith.constant 0 : i32
    %c0_i32_1 = arith.constant 0 : i32
    return %arg0, %c0_i32, %c0_i32_0 : i32, i32, i32
  }
}

</mosaic_0001>

<bundles_post_ra>
// kernel: rec_model_lstm_forward.1
= control target key start
LH: loop header
LB: loop body
LE: loop exit
PB: predicated region body
PF: predicated region fallthrough
CT: control target
= control target key end

     0   :  { %11 = vsyncpa [#allocation5], 0  ;;  %s3607_s0 = inlined_call_operand.vmem [shape: f32[8,8,512], index: 0, kind: input, shape index: {}]   ;;  %s3608_s1 = inlined_call_operand.hbm [shape: bf16[2,128,512], index: 1, kind: input, shape index: {}]   ;;  %s3609_s2 = inlined_call_operand.hbm [shape: bf16[2,128,512], index: 2, kind: input, shape index: {}]   ;;  %s3610_s3 = inlined_call_operand.vmem [shape: f32[2,1,512], index: 3, kind: input, shape index: {}]   ;;  %s3611_s4 = inlined_call_operand.vmem [shape: f32[128,128], index: 4, kind: input, shape index: {}]   ;;  %s3612_s5 = inlined_call_operand.vmem [shape: f32[1,128], index: 5, kind: input, shape index: {}]   ;;  %s3613_s6 = inlined_call_operand.vmem [shape: f32[2,8,128], index: 6, kind: output, shape index: {}]  }
   0x1   :  { %13 = vsyncpa [#allocation5 + $0x1], 0 }
   0x2   :  { %14 = vsyncpa [#allocation7], 0 }
   0x3   :  { %16 = vsyncpa [#allocation7 + $0x1], 0  ;;  %s2799_s21 = smov 0   ;;  %s2801_s22 = smov 0  }
   0x4   :  { %s2803_s23 = smov 0   ;;  %s2805_s24 = smov 0  }
   0x5 LB: > { %s2818_s25 = sadd.s32 4294967295, %s2753_s24   ;;  %s2821_s26 = sadd.s32 1, %s2753_s24   ;;  %s2753_s24 = sphi %s2805_s24, %s3623_s24   ;;  %s2749_s23 = sphi %s2803_s23, %s3622_s23   ;;  %s2745_s22 = sphi %s2801_s22, %s3621_s22   ;;  %s2741_s21 = sphi %s2799_s21, %s3620_s21  }
   0x6   : > { %s47_s27 = ssub.s32 %s2753_s24, %s2821_s26  ;;  %s50_s28 = sadd.s32 1, %s2749_s23 }
   0x7   : > { %p48_p0 = scmp.eq.s32.totalorder %s47_s27, 0  ;;  %p57_p1 = scmp.ne.s32.totalorder %s2749_s23, %s2745_s22 }
   0x8   : > { %p58_p2 = scmp.eq.s32.totalorder %s2753_s24, 0  ;;  %p63_p3 = scmp.ne.s32.totalorder %s2745_s22, %s2741_s21 }
   0x9   : > { %s2831_s29 = scalar_select %p48_p0, %s2749_s23, %s50_s28  }
   0xa   : > { %p59_p4 = por %p58_p2, %p57_p1  ;;  %p64_p5 = scmp.eq.s32.totalorder %s2818_s25, 0 }
   0xb   : > { %p2359_p6 = scmp.lt.s32.totalorder %s2753_s24, 2  ;;  %s2840_s7 = sand.u32 1, %s2749_s23  }
   0xc   : > { %p2835_p7 = por %p64_p5, %p63_p3  ;;  %s2166_s8 = sshll.u32 %s2840_s7, 8 }
   0xd   : > { %s2270_s9 = sshll.u32 %s2753_s24, 12  ;;  %s220_s13 = scalar_lea.vmem [#allocation4], %s2166_s8 }
   0xe   : > { %s3615_s30 = scalar_select %p2835_p7, 1, 0 }
   0xf   : > { %s2849_s12 = scalar_lea.hbm %s3608_s1, %s2270_s9  ;;  %s227_s14 = sshll.u32 %s220_s13, 4  ;;  %s2853_s14 = int_to_ptr.vmem [resolvable:$true] %s227_s14 }
  0x10   : > { %p2855_p8 = pnand %p2359_p6, %p59_p4  ;;  %s217_s16 = scalar_lea.sflag [#allocation5], %s2840_s7 }
  0x11   : > { %s2655_s17 = scalar_lea.hbm %s2849_s12, 4096  ;;  %s2660_s20 = scalar_lea.hbm %s3608_s1, 8192 }
  0x12   : > { %p2656_p10 = scmp.ne.s32.totalorder %s2849_s12, %s2655_s17  ;;  %p2657_p11 = pneg %p2855_p8 }
  0x13   : > { %p2661_p0 = scmp.lt.u32.totalorder %s2849_s12, %s3608_s1  ;;  %p2662_p1 = scmp.lt.u32.totalorder %s2660_s20, %s2655_s17 }
  0x14   : > { %p2658_p12 = pnand %p2657_p11, %p2656_p10  ;;  %p2664_p3 = scmp.lt.u32.totalorder %s2655_s17, %s2849_s12 }
  0x15   : > { %p2663_p2 = por %p2662_p1, %p2661_p0 }
  0x16   : > { %p2659_p13 = pneg %p2658_p12 }
  0x17   : > { %p2665_p4 = por %p2664_p3, %p2663_p2 }
  0x19   : > { %p2666_p5 = pnand %p2665_p4, %p2659_p13 }
  0x1b   : > { %2669 = shalt.err (!%p2666_p5)
}
  0x1c   : > { %s2670_s28 = scalar_lea.vmem %s2853_s14, 4096  ;;  %s2755_s10 = smov [#allocation4]  }
  0x1d   : > { %p2671_p6 = scmp.ne.s32.totalorder %s2853_s14, %s2670_s28  ;;  %s2675_s11 = sshll.u32 %s2755_s10, 4  ;;  %s2676_s11 = int_to_ptr.vmem [resolvable:$false] %s2675_s11 }
  0x1e   : > { %s2677_s13 = scalar_lea.vmem %s2676_s11, 8192  ;;  %p2678_p9 = scmp.lt.s32.totalorder %s2853_s14, %s2676_s11 }
  0x1f   : > { %p2673_p10 = pnand %p2671_p6, %p2657_p11  ;;  %p2679_p0 = scmp.lt.s32.totalorder %s2677_s13, %s2670_s28 }
  0x21   : > { %p2674_p12 = pneg %p2673_p10  ;;  %p2680_p1 = por %p2679_p0, %p2678_p9 }
  0x23   : > { %p2681_p2 = pnand %p2680_p1, %p2674_p12 }
  0x25   : > { %2684 = shalt.err (!%p2681_p2)
}
  0x26   : > { %s2756_s17 = smov 256   ;;  %s2757_s18 = smov 16  }
  0x27   : > { %2355 = dma.hbm_to_vmem [thread:$0]  (!%p2855_p8), %s2849_s12, 4096, %s2853_s14, %s217_s16, %s2756_s17, %s2756_s17, %s2757_s18  }
  0x28   : > { %p263_p9 = scmp.lt.s32.totalorder %s2753_s24, 3  ;;  %s2897_s21 = scalar_lea.hbm %s3609_s2, %s2270_s9 }
  0x29   : > { %p3617_p13 = scmp.ge.s32.totalorder %s2753_s24, 1  ;;  %s241_s28 = scalar_lea.vmem [#allocation6], %s2166_s8 }
  0x2a   : > { %s248_s10 = sshll.u32 %s241_s28, 4  ;;  %s238_s12 = scalar_lea.sflag [#allocation7], %s2840_s7  ;;  %s2907_s10 = int_to_ptr.vmem [resolvable:$true] %s248_s10 }
  0x2b   : > { %p2901_p3 = pnand %p3617_p13, %p263_p9  ;;  %s2685_s14 = scalar_lea.hbm %s2897_s21, 4096 }
  0x2c   : > { %p2686_p4 = scmp.ne.s32.totalorder %s2897_s21, %s2685_s14  ;;  %s2690_s16 = scalar_lea.hbm %s3609_s2, 8192 }
  0x2d   : > { %p2691_p10 = scmp.lt.u32.totalorder %s2897_s21, %s3609_s2  ;;  %p2692_p12 = scmp.lt.u32.totalorder %s2690_s16, %s2685_s14 }
  0x2e   : > { %p2688_p5 = pnand %p2686_p4, %p2657_p11  ;;  %p2694_p1 = scmp.lt.u32.totalorder %s2685_s14, %s2897_s21 }
  0x2f   : > { %p2693_p0 = por %p2692_p12, %p2691_p10 }
  0x30   : > { %p2689_p6 = pneg %p2688_p5 }
  0x31   : > { %p2695_p2 = por %p2694_p1, %p2693_p0 }
  0x33   : > { %p2696_p9 = pnand %p2695_p2, %p2689_p6 }
  0x35   : > { %2699 = shalt.err (!%p2696_p9)
}
  0x36   : > { %s2700_s8 = scalar_lea.vmem %s2907_s10, 4096  ;;  %s2758_s19 = smov [#allocation6]  }
  0x37   : > { %p2701_p13 = scmp.ne.s32.totalorder %s2907_s10, %s2700_s8  ;;  %s2705_s20 = sshll.u32 %s2758_s19, 4  ;;  %s2706_s20 = int_to_ptr.vmem [resolvable:$false] %s2705_s20 }
  0x38   : > { %s2707_s28 = scalar_lea.vmem %s2706_s20, 8192  ;;  %p2708_p7 = scmp.lt.s32.totalorder %s2907_s10, %s2706_s20 }
  0x39   : > { %p2703_p4 = pnand %p2701_p13, %p2657_p11  ;;  %p2709_p10 = scmp.lt.s32.totalorder %s2707_s28, %s2700_s8 }
  0x3b   : > { %p2704_p5 = pneg %p2703_p4  ;;  %p2710_p12 = por %p2709_p10, %p2708_p7 }
  0x3d   : > { %p2711_p0 = pnand %p2710_p12, %p2704_p5 }
  0x3f   : > { %2714 = shalt.err (!%p2711_p0)
}
  0x40   : > { %2358 = dma.hbm_to_vmem [thread:$0]  (!%p2855_p8), %s2897_s21, 4096, %s2907_s10, %s238_s12, %s2756_s17, %s2756_s17, %s2757_s18  }
  0x41   : > { %267 = sbr.rel (%p2901_p3) target bundleno = 2698 (0xa8a), region = 44  ;;  %s269_s14 = sand.u32 (!%p2901_p3), 1, %s2745_s22  }
  0x42   : > { %s2173_s24 = sshll.u32 (!%p2901_p3), %s269_s14, 8  ;;  %s270_s9 = scalar_lea.sflag (!%p2901_p3), [#allocation5], %s269_s14 }
  0x43   : > { %s2941_s16 = scalar_lea.vmem (!%p2901_p3), [#allocation4], %s2173_s24  ;;  %p3619_p7 = scmp.ne.s32.totalorder (!%p2901_p3), %s3615_s30, 0 }
  0x48   : > { %2732 = dma.done.wait (%p3619_p7), %s270_s9, 4096  }
  0x49   : > { %2734 = vsyncadd (%p3619_p7), %s270_s9, 4294963200  ;;  %s279_s7 = scalar_lea.sflag [#allocation7], %s269_s14  ;;  %s2947_s15 = scalar_lea.vmem [#allocation6], %s2173_s24 }
  0x4a   : > { %2736 = dma.done.wait (%p3619_p7), %s279_s7, 4096  }
  0x4b   : > { %2738 = vsyncadd (%p3619_p7), %s279_s7, 4294963200  ;;  %p319_p8 = scmp.lt.s32.totalorder %s2818_s25, 1  ;;  %p2177_p11 = scmp.ne.s32.totalorder %s2818_s25, 0 }
  0x4c   : > { %v332_v0 = vld [vmem:[%s3607_s0] sm:$0xff] (!%p2177_p11)  ;;  %v333_v1 = vld [vmem:[%s3607_s0 + $0x8] sm:$0xff] (!%p2177_p11)  ;;  %v334_v2 = vld [vmem:[%s3607_s0 + $0x10] sm:$0xff] (!%p2177_p11) }
  0x4d   : > { %s320_s17 = scalar_select %p319_p8, %s2818_s25, 1 }
  0x4e   : > { %331 = sbr.rel (%p2177_p11) target bundleno = 94 (0x5e), region = 56  ;;  %364 = vst [vmem:[#allocation2] sm:$0xff] (!%p2177_p11), %v332_v0  ;;  %365 = vst [vmem:[#allocation2 + $0x8] sm:$0xff] (!%p2177_p11), %v333_v1  ;;  %v335_v3 = vld [vmem:[%s3607_s0 + $0x18] sm:$0xff] (!%p2177_p11)  ;;  %v336_v4 = vld [vmem:[%s3607_s0 + $0x20] sm:$0xff] (!%p2177_p11) }
  0x4f   : > { %s2175_s18 = sshll.u32 %s320_s17, 2  ;;  %s2176_s21 = sshll.u32 %s320_s17, 3  ;;  %366 = vst [vmem:[#allocation2 + $0x10] sm:$0xff] (!%p2177_p11), %v334_v2  ;;  %v337_v5 = vld [vmem:[%s3607_s0 + $0x28] sm:$0xff] (!%p2177_p11)  ;;  %367 = vst [vmem:[#allocation2 + $0x18] sm:$0xff] (!%p2177_p11), %v335_v3  ;;  %v338_v6 = vld [vmem:[%s3607_s0 + $0x30] sm:$0xff] (!%p2177_p11) }
  0x50   : > { %s2958_s12 = scalar_lea.vmem %s3610_s3, %s2175_s18  ;;  %s2963_s8 = scalar_lea.vmem %s3613_s6, %s2176_s21  ;;  %368 = vst [vmem:[#allocation2 + $0x20] sm:$0xff] (!%p2177_p11), %v336_v4  ;;  %369 = vst [vmem:[#allocation2 + $0x28] sm:$0xff] (!%p2177_p11), %v337_v5  ;;  %v339_v7 = vld [vmem:[%s3607_s0 + $0x38] sm:$0xff] (!%p2177_p11)  ;;  %v340_v8 = vld [vmem:[%s3607_s0 + $0x40] sm:$0xff] (!%p2177_p11) }
  0x51   : > { %370 = vst [vmem:[#allocation2 + $0x30] sm:$0xff] (!%p2177_p11), %v338_v6  ;;  %371 = vst [vmem:[#allocation2 + $0x38] sm:$0xff] (!%p2177_p11), %v339_v7  ;;  %v341_v9 = vld [vmem:[%s3607_s0 + $0x48] sm:$0xff] (!%p2177_p11)  ;;  %v342_v10 = vld [vmem:[%s3607_s0 + $0x50] sm:$0xff] (!%p2177_p11) }
  0x52   : > { %372 = vst [vmem:[#allocation2 + $0x40] sm:$0xff] (!%p2177_p11), %v340_v8  ;;  %v343_v11 = vld [vmem:[%s3607_s0 + $0x58] sm:$0xff] (!%p2177_p11)  ;;  %373 = vst [vmem:[#allocation2 + $0x48] sm:$0xff] (!%p2177_p11), %v341_v9  ;;  %v344_v12 = vld [vmem:[%s3607_s0 + $0x60] sm:$0xff] (!%p2177_p11) }
  0x53   : > { %374 = vst [vmem:[#allocation2 + $0x50] sm:$0xff] (!%p2177_p11), %v342_v10  ;;  %375 = vst [vmem:[#allocation2 + $0x58] sm:$0xff] (!%p2177_p11), %v343_v11  ;;  %v345_v13 = vld [vmem:[%s3607_s0 + $0x68] sm:$0xff] (!%p2177_p11)  ;;  %v346_v14 = vld [vmem:[%s3607_s0 + $0x70] sm:$0xff] (!%p2177_p11) }
  0x54   : > { %376 = vst [vmem:[#allocation2 + $0x60] sm:$0xff] (!%p2177_p11), %v344_v12  ;;  %377 = vst [vmem:[#allocation2 + $0x68] sm:$0xff] (!%p2177_p11), %v345_v13  ;;  %v347_v15 = vld [vmem:[%s3607_s0 + $0x78] sm:$0xff] (!%p2177_p11)  ;;  %v348_v16 = vld [vmem:[%s3607_s0 + $0x80] sm:$0xff] (!%p2177_p11) }
  0x55   : > { %378 = vst [vmem:[#allocation2 + $0x70] sm:$0xff] %v346_v14  ;;  %v349_v17 = vld [vmem:[%s3607_s0 + $0x88] sm:$0xff]  ;;  %379 = vst [vmem:[#allocation2 + $0x78] sm:$0xff] %v347_v15  ;;  %v350_v18 = vld [vmem:[%s3607_s0 + $0x90] sm:$0xff] }
  0x56   : > { %380 = vst [vmem:[#allocation2 + $0x80] sm:$0xff] %v348_v16  ;;  %381 = vst [vmem:[#allocation2 + $0x88] sm:$0xff] %v349_v17  ;;  %v351_v19 = vld [vmem:[%s3607_s0 + $0x98] sm:$0xff]  ;;  %v352_v20 = vld [vmem:[%s3607_s0 + $0xa0] sm:$0xff] }
  0x57   : > { %382 = vst [vmem:[#allocation2 + $0x90] sm:$0xff] %v350_v18  ;;  %383 = vst [vmem:[#allocation2 + $0x98] sm:$0xff] %v351_v19  ;;  %v353_v21 = vld [vmem:[%s3607_s0 + $0xa8] sm:$0xff]  ;;  %v354_v22 = vld [vmem:[%s3607_s0 + $0xb0] sm:$0xff] }
  0x58   : > { %384 = vst [vmem:[#allocation2 + $0xa0] sm:$0xff] %v352_v20  ;;  %v355_v23 = vld [vmem:[%s3607_s0 + $0xb8] sm:$0xff]  ;;  %385 = vst [vmem:[#allocation2 + $0xa8] sm:$0xff] %v353_v21  ;;  %v356_v24 = vld [vmem:[%s3607_s0 + $0xc0] sm:$0xff] }
  0x59   : > { %386 = vst [vmem:[#allocation2 + $0xb0] sm:$0xff] %v354_v22  ;;  %387 = vst [vmem:[#allocation2 + $0xb8] sm:$0xff] %v355_v23  ;;  %v357_v25 = vld [vmem:[%s3607_s0 + $0xc8] sm:$0xff]  ;;  %v358_v26 = vld [vmem:[%s3607_s0 + $0xd0] sm:$0xff] }
  0x5a   : > { %388 = vst [vmem:[#allocation2 + $0xc0] sm:$0xff] %v356_v24  ;;  %389 = vst [vmem:[#allocation2 + $0xc8] sm:$0xff] %v357_v25  ;;  %v359_v27 = vld [vmem:[%s3607_s0 + $0xd8] sm:$0xff]  ;;  %v360_v28 = vld [vmem:[%s3607_s0 + $0xe0] sm:$0xff] }
  0x5b   : > { %390 = vst [vmem:[#allocation2 + $0xd0] sm:$0xff] %v358_v26  ;;  %v361_v29 = vld [vmem:[%s3607_s0 + $0xe8] sm:$0xff]  ;;  %391 = vst [vmem:[#allocation2 + $0xd8] sm:$0xff] %v359_v27  ;;  %v362_v30 = vld [vmem:[%s3607_s0 + $0xf0] sm:$0xff] }
  0x5c   : > { %392 = vst [vmem:[#allocation2 + $0xe0] sm:$0xff] %v360_v28  ;;  %393 = vst [vmem:[#allocation2 + $0xe8] sm:$0xff] %v361_v29  ;;  %v363_v31 = vld [vmem:[%s3607_s0 + $0xf8] sm:$0xff] }
  0x5d   : > { %394 = vst [vmem:[#allocation2 + $0xf0] sm:$0xff] %v362_v30  ;;  %395 = vst [vmem:[#allocation2 + $0xf8] sm:$0xff] %v363_v31 }
  0x5e PF: > { %p2178_p3 = scmp.le.s32.totalorder %s2818_s25, 0 }
  0x5f   : > { %v2399_v32 = vld [vmem:[%s2941_s16 + $0x4] ss:$16 sps:$4 sm:$0xff] (!%p2178_p3)   ;;  %v2401_v33 = vld [vmem:[%s2941_s16 + $0xc] ss:$16 sps:$4 sm:$0xff] (!%p2178_p3)   ;;  %v2759_v34 = vmov (!%p2178_p3), 0   ;;  %v752_v13 = vlaneseq (!%p2178_p3) }
  0x60   : > { %399 = sbr.rel (%p2178_p3) target bundleno = 371 (0x173), region = 60  ;;  %636 = vmatprep.mubr.bf16.mxu0 (!%p2178_p3), %v2759_v34  ;;  %709 = vmatprep.mubr.bf16.mxu1 (!%p2178_p3), %v2759_v34  ;;  %v2403_v35 = vld [vmem:[%s2941_s16] ss:$16 sps:$4 sm:$0xff] (!%p2178_p3)   ;;  %v2404_v36 = vld [vmem:[%s2941_s16 + $0x8] ss:$16 sps:$4 sm:$0xff] (!%p2178_p3)  }
  0x61   : > { %604 = vmatprep.subr.bf16.mxu0 (!%p2178_p3), %v2399_v32  ;;  %677 = vmatprep.subr.bf16.mxu1 (!%p2178_p3), %v2401_v33  ;;  %v2405_v37 = vld [vmem:[%s2941_s16 + $0x24] ss:$16 sps:$4 sm:$0xff] (!%p2178_p3)   ;;  %v2407_v38 = vld [vmem:[%s2941_s16 + $0x2c] ss:$16 sps:$4 sm:$0xff] (!%p2178_p3)   ;;  %v2409_v39 = vld [vmem:[%s2941_s16 + $0x20] ss:$16 sps:$4 sm:$0xff] (!%p2178_p3)  }
  0x62   : > { %605 = vmatpush1.bf16.msra.mxu0 (!%p2178_p3), %v2403_v35  ;;  %678 = vmatpush1.bf16.msra.mxu1 (!%p2178_p3), %v2404_v36  ;;  %v2410_v40 = vld [vmem:[%s2941_s16 + $0x28] ss:$16 sps:$4 sm:$0xff] (!%p2178_p3)   ;;  %v2411_v41 = vld [vmem:[%s2941_s16 + $0x44] ss:$16 sps:$4 sm:$0xff] (!%p2178_p3)   ;;  %v2413_v42 = vld [vmem:[%s2941_s16 + $0x4c] ss:$16 sps:$4 sm:$0xff] (!%p2178_p3)  }
  0x63   : > { %606 = vmatprep.subr.bf16.mxu0 (!%p2178_p3), %v2405_v37  ;;  %679 = vmatprep.subr.bf16.mxu1 (!%p2178_p3), %v2407_v38  ;;  %v2415_v43 = vld [vmem:[%s2941_s16 + $0x40] ss:$16 sps:$4 sm:$0xff] (!%p2178_p3)   ;;  %v2416_v44 = vld [vmem:[%s2941_s16 + $0x48] ss:$16 sps:$4 sm:$0xff] (!%p2178_p3)   ;;  %v2417_v45 = vld [vmem:[%s2941_s16 + $0x64] ss:$16 sps:$4 sm:$0xff] (!%p2178_p3)  }
  0x64   : > { %v2419_v46 = vld [vmem:[%s2941_s16 + $0x6c] ss:$16 sps:$4 sm:$0xff] (!%p2178_p3)   ;;  %v2421_v47 = vld [vmem:[%s2941_s16 + $0x60] ss:$16 sps:$4 sm:$0xff] (!%p2178_p3)   ;;  %v2422_v48 = vld [vmem:[%s2941_s16 + $0x68] ss:$16 sps:$4 sm:$0xff] (!%p2178_p3)  }
  0x65   : > { %v2423_v49 = vld [vmem:[%s2941_s16 + $0x84] ss:$16 sps:$4 sm:$0xff] (!%p2178_p3)   ;;  %v2425_v50 = vld [vmem:[%s2941_s16 + $0x8c] ss:$16 sps:$4 sm:$0xff] (!%p2178_p3)   ;;  %v2427_v51 = vld [vmem:[%s2941_s16 + $0x80] ss:$16 sps:$4 sm:$0xff] (!%p2178_p3)  }
  0x66   : > { %607 = vmatpush1.bf16.msra.mxu0 (!%p2178_p3), %v2409_v39  ;;  %680 = vmatpush1.bf16.msra.mxu1 (!%p2178_p3), %v2410_v40  ;;  %v2428_v52 = vld [vmem:[%s2941_s16 + $0x88] ss:$16 sps:$4 sm:$0xff] (!%p2178_p3)   ;;  %v2429_v53 = vld [vmem:[%s2941_s16 + $0xa4] ss:$16 sps:$4 sm:$0xff] (!%p2178_p3)   ;;  %v2431_v54 = vld [vmem:[%s2941_s16 + $0xac] ss:$16 sps:$4 sm:$0xff] (!%p2178_p3)  }
  0x67   : > { %608 = vmatprep.subr.bf16.mxu0 %v2411_v41  ;;  %681 = vmatprep.subr.bf16.mxu1 %v2413_v42  ;;  %v2433_v55 = vld [vmem:[%s2941_s16 + $0xa0] ss:$16 sps:$4 sm:$0xff]   ;;  %v2434_v56 = vld [vmem:[%s2941_s16 + $0xa8] ss:$16 sps:$4 sm:$0xff]   ;;  %v2435_v57 = vld [vmem:[%s2941_s16 + $0xc4] ss:$16 sps:$4 sm:$0xff]  }
  0x68   : > { %v2437_v58 = vld [vmem:[%s2941_s16 + $0xcc] ss:$16 sps:$4 sm:$0xff]   ;;  %v2439_v59 = vld [vmem:[%s2941_s16 + $0xc0] ss:$16 sps:$4 sm:$0xff]   ;;  %v2440_v60 = vld [vmem:[%s2941_s16 + $0xc8] ss:$16 sps:$4 sm:$0xff]  }
  0x69   : > { %v2441_v61 = vld [vmem:[%s2941_s16 + $0xe4] ss:$16 sps:$4 sm:$0xff]   ;;  %v2443_v62 = vld [vmem:[%s2941_s16 + $0xec] ss:$16 sps:$4 sm:$0xff]   ;;  %v2445_v63 = vld [vmem:[%s2941_s16 + $0xe0] ss:$16 sps:$4 sm:$0xff]  }
  0x6a   : > { %609 = vmatpush1.bf16.msra.mxu0 %v2415_v43  ;;  %682 = vmatpush1.bf16.msra.mxu1 %v2416_v44  ;;  %v2446_v0 = vld [vmem:[%s2941_s16 + $0xe8] ss:$16 sps:$4 sm:$0xff]   ;;  %v432_v1 = vld [vmem:[#allocation3] sm:$0xff]  ;;  %v434_v4 = vld [vmem:[#allocation3 + $0x10] sm:$0xff]  ;;  %v753_v14 = vshrl.u32 %v752_v13, 7 }
  0x6b   : > { %610 = vmatprep.subr.bf16.mxu0 %v2417_v45  ;;  %683 = vmatprep.subr.bf16.mxu1 %v2419_v46  ;;  %v433_v2 = vld [vmem:[#allocation3 + $0x8] sm:$0xff]  ;;  %v435_v5 = vld [vmem:[#allocation3 + $0x18] sm:$0xff]  ;;  %v436_v7 = vld [vmem:[#allocation3 + $0x20] sm:$0xff] }
  0x6c   : > { %v440_v3 = vpack.c.bf16 %v433_v2, %v432_v1  ;;  %v441_v6 = vpack.c.bf16 %v435_v5, %v434_v4  ;;  %v437_v8 = vld [vmem:[#allocation3 + $0x28] sm:$0xff]  ;;  %v438_v10 = vld [vmem:[#allocation3 + $0x30] sm:$0xff]  ;;  %v439_v11 = vld [vmem:[#allocation3 + $0x38] sm:$0xff]  ;;  %v754_v15 = vsub.s32 0, %v753_v14  ;;  %v762_v16 = vsub.s32 2, %v753_v14 }
  0x6d   : > { %v442_v9 = vpack.c.bf16 %v437_v8, %v436_v7  ;;  %v443_v12 = vpack.c.bf16 %v439_v11, %v438_v10  ;;  %v750_v17 = vld [vmem:[%s2958_s12] sm:$0xf]  ;;  %v758_v18 = vsub.s32 1, %v753_v14  ;;  %v766_v19 = vsub.s32 3, %v753_v14 }
  0x6e   : > { %611 = vmatpush1.bf16.msra.mxu0 %v2421_v47  ;;  %684 = vmatpush1.bf16.msra.mxu1 %v2422_v48  ;;  %v3104_v20 = vrot.slane %v750_v17, %v754_v15  ;;  %v3106_v21 = vrot.slane %v750_v17, %v762_v16 }
  0x6f   : > { %612 = vmatprep.subr.bf16.mxu0 %v2423_v49  ;;  %685 = vmatprep.subr.bf16.mxu1 %v2425_v50  ;;  %v3108_v22 = vrot.slane %v750_v17, %v758_v18  ;;  %v3110_v23 = vrot.slane %v750_v17, %v766_v19 }
  0x72   : > { %613 = vmatpush1.bf16.msra.mxu0 %v2427_v51  ;;  %686 = vmatpush1.bf16.msra.mxu1 %v2428_v52 }
  0x73   : > { %614 = vmatprep.subr.bf16.mxu0 %v2429_v53  ;;  %687 = vmatprep.subr.bf16.mxu1 %v2431_v54 }
  0x76   : > { %615 = vmatpush1.bf16.msra.mxu0 %v2433_v55  ;;  %688 = vmatpush1.bf16.msra.mxu1 %v2434_v56 }
  0x77   : > { %616 = vmatprep.subr.bf16.mxu0 %v2435_v57  ;;  %689 = vmatprep.subr.bf16.mxu1 %v2437_v58 }
  0x7a   : > { %617 = vmatpush1.bf16.msra.mxu0 %v2439_v59  ;;  %690 = vmatpush1.bf16.msra.mxu1 %v2440_v60 }
  0x7b   : > { %618 = vmatprep.subr.bf16.mxu0 %v2441_v61  ;;  %691 = vmatprep.subr.bf16.mxu1 %v2443_v62 }
  0x7e   : > { %619 = vmatpush1.bf16.msra.mxu0 %v2445_v63  ;;  %692 = vmatpush1.bf16.msra.mxu1 %v2446_v0 }
  0x81   : > { %637 = vmatmul.mubr.bf16.vlgmr.msra.gmra.mrb[0].mxu0 %v440_v3  ;;  %710 = vmatmul.mubr.bf16.vlgmr.msra.gmra.mrb[0].mxu1 %v440_v3 }
  0x82   : > { %646 = vmatprep.mubr.bf16.mxu0 %v2759_v34  ;;  %719 = vmatprep.mubr.bf16.mxu1 %v2759_v34 }
  0x89   : > { %647 = vmatmul.mubr.bf16.gmra.mrb[4].mxu0 %v441_v6  ;;  %720 = vmatmul.mubr.bf16.gmra.mrb[4].mxu1 %v441_v6 }
  0x8a   : > { %656 = vmatprep.mubr.bf16.mxu0 %v2759_v34  ;;  %729 = vmatprep.mubr.bf16.mxu1 %v2759_v34 }
  0x91   : > { %657 = vmatmul.mubr.bf16.gmra.mrb[8].mxu0 %v442_v9  ;;  %730 = vmatmul.mubr.bf16.gmra.mrb[8].mxu1 %v442_v9 }
  0x92   : > { %666 = vmatprep.mubr.bf16.mxu0 %v2759_v34  ;;  %739 = vmatprep.mubr.bf16.mxu1 %v2759_v34 }
  0x99   : > { %667 = vmatmul.mubr.bf16.gmra.mrb[12].mxu0 %v443_v12  ;;  %740 = vmatmul.mubr.bf16.gmra.mrb[12].mxu1 %v443_v12 }
 0x154   : > { %v638_v24 = vpop.f32.mrb[0].mxu0  ;;  %v711_v25 = vpop.f32.mrb[0].mxu1 }
 0x155   : > { %v772_v26 = vadd.f32 %v3104_v20, %v638_v24  ;;  %v774_v27 = vadd.f32 %v3106_v21, %v711_v25  ;;  %v640_v28 = vpop.f32.mrb[1].mxu0  ;;  %v713_v29 = vpop.f32.mrb[1].mxu1 }
 0x156   : > { %v773_v30 = vadd.f32 %v3108_v22, %v640_v28  ;;  %v775_v31 = vadd.f32 %v3110_v23, %v713_v29  ;;  %v642_v32 = vpop.f32.mrb[2].mxu0  ;;  %v715_v33 = vpop.f32.mrb[2].mxu1 }
 0x157   : > { %804 = vst [vmem:[#allocation2] sm:$0xff] %v772_v26  ;;  %806 = vst [vmem:[#allocation2 + $0x10] sm:$0xff] %v774_v27  ;;  %v776_v34 = vadd.f32 %v3104_v20, %v642_v32  ;;  %v778_v35 = vadd.f32 %v3106_v21, %v715_v33  ;;  %v644_v36 = vpop.f32.mrb[3].mxu0  ;;  %v717_v37 = vpop.f32.mrb[3].mxu1 }
 0x158   : > { %805 = vst [vmem:[#allocation2 + $0x8] sm:$0xff] %v773_v30  ;;  %807 = vst [vmem:[#allocation2 + $0x18] sm:$0xff] %v775_v31  ;;  %v777_v38 = vadd.f32 %v3108_v22, %v644_v36  ;;  %v779_v39 = vadd.f32 %v3110_v23, %v717_v37 }
 0x159   : > { %808 = vst [vmem:[#allocation2 + $0x20] sm:$0xff] %v776_v34  ;;  %810 = vst [vmem:[#allocation2 + $0x30] sm:$0xff] %v778_v35 }
 0x15a   : > { %809 = vst [vmem:[#allocation2 + $0x28] sm:$0xff] %v777_v38  ;;  %811 = vst [vmem:[#allocation2 + $0x38] sm:$0xff] %v779_v39 }
 0x15c   : > { %v648_v40 = vpop.f32.mrb[4].mxu0  ;;  %v721_v41 = vpop.f32.mrb[4].mxu1 }
 0x15d   : > { %v780_v42 = vadd.f32 %v3104_v20, %v648_v40  ;;  %v782_v43 = vadd.f32 %v3106_v21, %v721_v41  ;;  %v650_v44 = vpop.f32.mrb[5].mxu0  ;;  %v723_v45 = vpop.f32.mrb[5].mxu1 }
 0x15e   : > { %v781_v46 = vadd.f32 %v3108_v22, %v650_v44  ;;  %v783_v47 = vadd.f32 %v3110_v23, %v723_v45  ;;  %v652_v48 = vpop.f32.mrb[6].mxu0  ;;  %v725_v49 = vpop.f32.mrb[6].mxu1 }
 0x15f   : > { %812 = vst [vmem:[#allocation2 + $0x40] sm:$0xff] %v780_v42  ;;  %814 = vst [vmem:[#allocation2 + $0x50] sm:$0xff] %v782_v43  ;;  %v784_v50 = vadd.f32 %v3104_v20, %v652_v48  ;;  %v786_v51 = vadd.f32 %v3106_v21, %v725_v49  ;;  %v654_v52 = vpop.f32.mrb[7].mxu0  ;;  %v727_v53 = vpop.f32.mrb[7].mxu1 }
 0x160   : > { %813 = vst [vmem:[#allocation2 + $0x48] sm:$0xff] %v781_v46  ;;  %815 = vst [vmem:[#allocation2 + $0x58] sm:$0xff] %v783_v47  ;;  %v785_v54 = vadd.f32 %v3108_v22, %v654_v52  ;;  %v787_v55 = vadd.f32 %v3110_v23, %v727_v53 }
 0x161   : > { %816 = vst [vmem:[#allocation2 + $0x60] sm:$0xff] %v784_v50  ;;  %818 = vst [vmem:[#allocation2 + $0x70] sm:$0xff] %v786_v51 }
 0x162   : > { %817 = vst [vmem:[#allocation2 + $0x68] sm:$0xff] %v785_v54  ;;  %819 = vst [vmem:[#allocation2 + $0x78] sm:$0xff] %v787_v55 }
 0x164   : > { %v658_v56 = vpop.f32.mrb[8].mxu0  ;;  %v731_v57 = vpop.f32.mrb[8].mxu1 }
 0x165   : > { %v788_v58 = vadd.f32 %v3104_v20, %v658_v56  ;;  %v790_v59 = vadd.f32 %v3106_v21, %v731_v57  ;;  %v660_v60 = vpop.f32.mrb[9].mxu0  ;;  %v733_v61 = vpop.f32.mrb[9].mxu1 }
 0x166   : > { %v789_v62 = vadd.f32 %v3108_v22, %v660_v60  ;;  %v791_v63 = vadd.f32 %v3110_v23, %v733_v61  ;;  %v662_v0 = vpop.f32.mrb[10].mxu0  ;;  %v735_v1 = vpop.f32.mrb[10].mxu1 }
 0x167   : > { %820 = vst [vmem:[#allocation2 + $0x80] sm:$0xff] %v788_v58  ;;  %822 = vst [vmem:[#allocation2 + $0x90] sm:$0xff] %v790_v59  ;;  %v792_v2 = vadd.f32 %v3104_v20, %v662_v0  ;;  %v794_v3 = vadd.f32 %v3106_v21, %v735_v1  ;;  %v664_v4 = vpop.f32.mrb[11].mxu0  ;;  %v737_v5 = vpop.f32.mrb[11].mxu1 }
 0x168   : > { %821 = vst [vmem:[#allocation2 + $0x88] sm:$0xff] %v789_v62  ;;  %823 = vst [vmem:[#allocation2 + $0x98] sm:$0xff] %v791_v63  ;;  %v793_v6 = vadd.f32 %v3108_v22, %v664_v4  ;;  %v795_v7 = vadd.f32 %v3110_v23, %v737_v5 }
 0x169   : > { %824 = vst [vmem:[#allocation2 + $0xa0] sm:$0xff] %v792_v2  ;;  %826 = vst [vmem:[#allocation2 + $0xb0] sm:$0xff] %v794_v3 }
 0x16a   : > { %825 = vst [vmem:[#allocation2 + $0xa8] sm:$0xff] %v793_v6  ;;  %827 = vst [vmem:[#allocation2 + $0xb8] sm:$0xff] %v795_v7 }
 0x16c   : > { %v668_v8 = vpop.f32.mrb[12].mxu0  ;;  %v741_v9 = vpop.f32.mrb[12].mxu1 }
 0x16d   : > { %v796_v10 = vadd.f32 %v3104_v20, %v668_v8  ;;  %v798_v11 = vadd.f32 %v3106_v21, %v741_v9  ;;  %v670_v12 = vpop.f32.mrb[13].mxu0  ;;  %v743_v13 = vpop.f32.mrb[13].mxu1 }
 0x16e   : > { %v797_v14 = vadd.f32 %v3108_v22, %v670_v12  ;;  %v799_v15 = vadd.f32 %v3110_v23, %v743_v13  ;;  %v672_v16 = vpop.f32.mrb[14].mxu0  ;;  %v745_v17 = vpop.f32.mrb[14].mxu1 }
 0x16f   : > { %828 = vst [vmem:[#allocation2 + $0xc0] sm:$0xff] %v796_v10  ;;  %830 = vst [vmem:[#allocation2 + $0xd0] sm:$0xff] %v798_v11  ;;  %v800_v18 = vadd.f32 %v3104_v20, %v672_v16  ;;  %v802_v19 = vadd.f32 %v3106_v21, %v745_v17  ;;  %v674_v24 = vpop.f32.mrb[15].mxu0  ;;  %v747_v25 = vpop.f32.mrb[15].mxu1 }
 0x170   : > { %829 = vst [vmem:[#allocation2 + $0xc8] sm:$0xff] %v797_v14  ;;  %831 = vst [vmem:[#allocation2 + $0xd8] sm:$0xff] %v799_v15  ;;  %v801_v26 = vadd.f32 %v3108_v22, %v674_v24  ;;  %v803_v27 = vadd.f32 %v3110_v23, %v747_v25 }
 0x171   : > { %832 = vst [vmem:[#allocation2 + $0xe0] sm:$0xff] %v800_v18  ;;  %834 = vst [vmem:[#allocation2 + $0xf0] sm:$0xff] %v802_v19 }
 0x172   : > { %833 = vst [vmem:[#allocation2 + $0xe8] sm:$0xff] %v801_v26  ;;  %835 = vst [vmem:[#allocation2 + $0xf8] sm:$0xff] %v803_v27 }
 0x173 PF: > { %v3145_v20 = vld [vmem:[%s2947_s15 + $0x4] ss:$16 sps:$4 sm:$0xff]   ;;  %v3148_v21 = vld [vmem:[%s2947_s15] ss:$16 sps:$4 sm:$0xff]   ;;  %v2760_v22 = vmov 0   ;;  %v869_v58 = vld [vmem:[#allocation2 + $0x8] sm:$0xff] }
 0x174   : > { %1064 = vmatprep.mubr.bf16.mxu0 %v2760_v22  ;;  %1105 = vmatprep.mubr.bf16.mxu1 %v2760_v22  ;;  %v3154_v23 = vld [vmem:[%s2947_s15 + $0x24] ss:$16 sps:$4 sm:$0xff]   ;;  %v3158_v28 = vld [vmem:[%s2947_s15 + $0x20] ss:$16 sps:$4 sm:$0xff]   ;;  %v3165_v30 = vld [vmem:[%s2947_s15 + $0xc] ss:$16 sps:$4 sm:$0xff]  }
 0x175   : > { %1032 = vmatprep.subr.bf16.mxu0 %v3145_v20  ;;  %v3162_v29 = vld [vmem:[%s2947_s15 + $0x44] ss:$16 sps:$4 sm:$0xff]   ;;  %v3168_v31 = vld [vmem:[%s2947_s15 + $0x8] ss:$16 sps:$4 sm:$0xff]   ;;  %v3172_v32 = vld [vmem:[%s2947_s15 + $0x40] ss:$16 sps:$4 sm:$0xff]   ;;  %1073 = vmatprep.subr.bf16.mxu1 %v3165_v30 }
 0x176   : > { %1033 = vmatpush1.bf16.msra.mxu0 %v3148_v21  ;;  %v3177_v33 = vld [vmem:[%s2947_s15 + $0x64] ss:$16 sps:$4 sm:$0xff]   ;;  %1074 = vmatpush1.bf16.msra.mxu1 %v3168_v31  ;;  %v3181_v34 = vld [vmem:[%s2947_s15 + $0x2c] ss:$16 sps:$4 sm:$0xff]   ;;  %v3184_v35 = vld [vmem:[%s2947_s15 + $0x28] ss:$16 sps:$4 sm:$0xff]  }
 0x177   : > { %1034 = vmatprep.subr.bf16.mxu0 %v3154_v23  ;;  %1075 = vmatprep.subr.bf16.mxu1 %v3181_v34  ;;  %v3189_v36 = vld [vmem:[%s2947_s15 + $0x60] ss:$16 sps:$4 sm:$0xff]   ;;  %v3192_v37 = vld [vmem:[%s2947_s15 + $0x84] ss:$16 sps:$4 sm:$0xff]   ;;  %v3195_v38 = vld [vmem:[%s2947_s15 + $0x4c] ss:$16 sps:$4 sm:$0xff]  }
 0x178   : > { %v3200_v39 = vld [vmem:[%s2947_s15 + $0x48] ss:$16 sps:$4 sm:$0xff]   ;;  %v3204_v40 = vld [vmem:[%s2947_s15 + $0x6c] ss:$16 sps:$4 sm:$0xff]   ;;  %v3208_v41 = vld [vmem:[%s2947_s15 + $0x80] ss:$16 sps:$4 sm:$0xff]  }
 0x179   : > { %v3212_v42 = vld [vmem:[%s2947_s15 + $0xa4] ss:$16 sps:$4 sm:$0xff]   ;;  %v3216_v43 = vld [vmem:[%s2947_s15 + $0x68] ss:$16 sps:$4 sm:$0xff]   ;;  %v3220_v44 = vld [vmem:[%s2947_s15 + $0x8c] ss:$16 sps:$4 sm:$0xff]  }
 0x17a   : > { %1035 = vmatpush1.bf16.msra.mxu0 %v3158_v28  ;;  %1076 = vmatpush1.bf16.msra.mxu1 %v3184_v35  ;;  %v3224_v45 = vld [vmem:[%s2947_s15 + $0xa0] ss:$16 sps:$4 sm:$0xff]   ;;  %v3227_v46 = vld [vmem:[%s2947_s15 + $0xc4] ss:$16 sps:$4 sm:$0xff]   ;;  %v3232_v47 = vld [vmem:[%s2947_s15 + $0x88] ss:$16 sps:$4 sm:$0xff]  }
 0x17b   : > { %1036 = vmatprep.subr.bf16.mxu0 %v3162_v29  ;;  %1077 = vmatprep.subr.bf16.mxu1 %v3195_v38  ;;  %v3236_v48 = vld [vmem:[%s2947_s15 + $0xac] ss:$16 sps:$4 sm:$0xff]   ;;  %v3240_v49 = vld [vmem:[%s2947_s15 + $0xc0] ss:$16 sps:$4 sm:$0xff]   ;;  %v3244_v50 = vld [vmem:[%s2947_s15 + $0xe4] ss:$16 sps:$4 sm:$0xff]  }
 0x17c   : > { %v3248_v51 = vld [vmem:[%s2947_s15 + $0xa8] ss:$16 sps:$4 sm:$0xff]   ;;  %v3252_v52 = vld [vmem:[%s2947_s15 + $0xcc] ss:$16 sps:$4 sm:$0xff]   ;;  %v3256_v53 = vld [vmem:[%s2947_s15 + $0xe0] ss:$16 sps:$4 sm:$0xff]  }
 0x17d   : > { %v3261_v54 = vld [vmem:[%s2947_s15 + $0xc8] ss:$16 sps:$4 sm:$0xff]   ;;  %v3265_v55 = vld [vmem:[%s2947_s15 + $0xec] ss:$16 sps:$4 sm:$0xff]   ;;  %v868_v57 = vld [vmem:[#allocation2] sm:$0xff]  ;;  %vm2762_vm0 = vmmov 0  }
 0x17e   : > { %1037 = vmatpush1.bf16.msra.mxu0 %v3172_v32  ;;  %1078 = vmatpush1.bf16.msra.mxu1 %v3200_v39  ;;  %v3270_v56 = vld [vmem:[%s2947_s15 + $0xe8] ss:$16 sps:$4 sm:$0xff]   ;;  %v870_v9 = vld [vmem:[#allocation2 + $0x10] sm:$0xff] }
 0x17f   : > { %1038 = vmatprep.subr.bf16.mxu0 %v3177_v33  ;;  %1079 = vmatprep.subr.bf16.mxu1 %v3204_v40  ;;  %v871_v3 = vld [vmem:[#allocation2 + $0x18] sm:$0xff] }
 0x182   : > { %1039 = vmatpush1.bf16.msra.mxu0 %v3189_v36  ;;  %1080 = vmatpush1.bf16.msra.mxu1 %v3216_v43 }
 0x183   : > { %1040 = vmatprep.subr.bf16.mxu0 %v3192_v37  ;;  %1081 = vmatprep.subr.bf16.mxu1 %v3220_v44 }
 0x186   : > { %1041 = vmatpush1.bf16.msra.mxu0 %v3208_v41  ;;  %1082 = vmatpush1.bf16.msra.mxu1 %v3232_v47 }
 0x187   : > { %1042 = vmatprep.subr.bf16.mxu0 %v3212_v42  ;;  %1083 = vmatprep.subr.bf16.mxu1 %v3236_v48 }
 0x18a   : > { %1043 = vmatpush1.bf16.msra.mxu0 %v3224_v45  ;;  %1084 = vmatpush1.bf16.msra.mxu1 %v3248_v51 }
 0x18b   : > { %1044 = vmatprep.subr.bf16.mxu0 %v3227_v46  ;;  %1085 = vmatprep.subr.bf16.mxu1 %v3252_v52 }
 0x18e   : > { %1045 = vmatpush1.bf16.msra.mxu0 %v3240_v49  ;;  %1086 = vmatpush1.bf16.msra.mxu1 %v3261_v54 }
 0x18f   : > { %1046 = vmatprep.subr.bf16.mxu0 %v3244_v50  ;;  %1087 = vmatprep.subr.bf16.mxu1 %v3265_v55 }
 0x192   : > { %1047 = vmatpush1.bf16.msra.mxu0 %v3256_v53  ;;  %1088 = vmatpush1.bf16.msra.mxu1 %v3270_v56 }
 0x193   : > { %1149 = vmatprep.subr.bf16.mxu0 %v3145_v20  ;;  %1190 = vmatprep.subr.bf16.mxu1 %v3165_v30 }
 0x195   : > { %1065 = vmatmul.mubr.bf16.vlgmr.msra.gmra.mrb[0].mxu0 %v2760_v22  ;;  %1106 = vmatmul.mubr.bf16.vlgmr.msra.gmra.mrb[0].mxu1 %v2760_v22 }
 0x196   : > { %1150 = vmatpush1.bf16.msra.mxu0 %v3148_v21  ;;  %1181 = vmatprep.mubr.bf16.mxu0 %v2760_v22 }
 0x197   : > { %1151 = vmatprep.subr.bf16.mxu0 %v3154_v23  ;;  %1191 = vmatpush1.bf16.msra.mxu1 %v3168_v31 }
 0x198   : > { %1192 = vmatprep.subr.bf16.mxu1 %v3181_v34  ;;  %1222 = vmatprep.mubr.bf16.mxu1 %v2760_v22 }
 0x19a   : > { %1152 = vmatpush1.bf16.msra.mxu0 %v3158_v28 }
 0x19b   : > { %1153 = vmatprep.subr.bf16.mxu0 %v3162_v29  ;;  %1193 = vmatpush1.bf16.msra.mxu1 %v3184_v35 }
 0x19c   : > { %1194 = vmatprep.subr.bf16.mxu1 %v3195_v38 }
 0x19e   : > { %1154 = vmatpush1.bf16.msra.mxu0 %v3172_v32 }
 0x19f   : > { %1155 = vmatprep.subr.bf16.mxu0 %v3177_v33  ;;  %1195 = vmatpush1.bf16.msra.mxu1 %v3200_v39 }
 0x1a0   : > { %1196 = vmatprep.subr.bf16.mxu1 %v3204_v40 }
 0x1a2   : > { %1156 = vmatpush1.bf16.msra.mxu0 %v3189_v36 }
 0x1a3   : > { %1157 = vmatprep.subr.bf16.mxu0 %v3192_v37  ;;  %1197 = vmatpush1.bf16.msra.mxu1 %v3216_v43 }
 0x1a4   : > { %1198 = vmatprep.subr.bf16.mxu1 %v3220_v44 }
 0x1a6   : > { %1158 = vmatpush1.bf16.msra.mxu0 %v3208_v41 }
 0x1a7   : > { %1159 = vmatprep.subr.bf16.mxu0 %v3212_v42  ;;  %1199 = vmatpush1.bf16.msra.mxu1 %v3232_v47 }
 0x1a8   : > { %1200 = vmatprep.subr.bf16.mxu1 %v3236_v48 }
 0x1aa   : > { %1160 = vmatpush1.bf16.msra.mxu0 %v3224_v45 }
 0x1ab   : > { %1161 = vmatprep.subr.bf16.mxu0 %v3227_v46  ;;  %1201 = vmatpush1.bf16.msra.mxu1 %v3248_v51 }
 0x1ac   : > { %1202 = vmatprep.subr.bf16.mxu1 %v3252_v52 }
 0x1ae   : > { %1162 = vmatpush1.bf16.msra.mxu0 %v3240_v49 }
 0x1af   : > { %1163 = vmatprep.subr.bf16.mxu0 %v3244_v50  ;;  %1203 = vmatpush1.bf16.msra.mxu1 %v3261_v54 }
 0x1b0   : > { %1204 = vmatprep.subr.bf16.mxu1 %v3265_v55 }
 0x1b2   : > { %1164 = vmatpush1.bf16.msra.mxu0 %v3256_v53 }
 0x1b3   : > { %1267 = vmatprep.subr.bf16.mxu0 %v3145_v20  ;;  %1205 = vmatpush1.bf16.msra.mxu1 %v3270_v56 }
 0x1b4   : > { %1308 = vmatprep.subr.bf16.mxu1 %v3165_v30 }
 0x268   : > { %v1066_v59 = vpop.f32.mrb[0].mxu0  ;;  %v1107_v4 = vpop.f32.mrb[0].mxu1 }
 0x269   : > { %v1114_v60 = vadd.f32 %v1066_v59, %v868_v57  ;;  %v1068_v61 = vpop.f32.mrb[1].mxu0  ;;  %v1109_v5 = vpop.f32.mrb[1].mxu1  ;;  %v1116_v11 = vadd.f32 %v1107_v4, %v870_v9 }
 0x26a   : > { %v1115_v62 = vadd.f32 %v1068_v61, %v869_v58  ;;  %v1070_v63 = vpop.f32.mrb[2].mxu0  ;;  %v1117_v6 = vadd.f32 %v1109_v5, %v871_v3  ;;  %v1111_v7 = vpop.f32.mrb[2].mxu1  ;;  %v1144_v61 = vld [vmem:[#allocation2 + $0x20] sm:$0xff] }
 0x26b   : > { %v2243_v0 = vmul.f32 -1.442695, %v1114_v60  ;;  %v1071_v1 = vpop.f32.mrb[3].mxu0  ;;  %v1112_v8 = vpop.f32.mrb[3].mxu1 }
 0x26c   : > { %v2244_v2 = vmul.f32 -1.442695, %v1115_v62  ;;  %v2245_v10 = vmul.f32 -1.442695, %v1117_v6  ;;  %v1145_v62 = vld [vmem:[#allocation2 + $0x28] sm:$0xff] }
 0x26d   : > { %2495 = vpow2.f32 %v2243_v0 }
 0x26e   : > { %2497 = vpow2.f32 %v2244_v2 }
 0x26f   : > { %2499 = vpow2.f32 %v2245_v10 }
 0x270   : > { %2501 = vtanh.f32 %v1116_v11  ;;  %v1147_v11 = vld [vmem:[#allocation2 + $0x38] sm:$0xff] }
 0x277   : > { %v2496_v12 = vpop.eup %2495 }
 0x278   : > { %v2498_v13 = vpop.eup %2497  ;;  %v1121_v14 = vadd.f32 1.0, %v2496_v12 }
 0x279   : > { %v1127_v15 = vadd.f32 1.0, %v2498_v13  ;;  %v2500_v16 = vpop.eup %2499  ;;  %v1146_v13 = vld [vmem:[#allocation2 + $0x30] sm:$0xff] }
 0x27a   : > { %2503 = vrcp.f32 %v1121_v14  ;;  %v2502_v17 = vpop.eup %2501  ;;  %v1134_v19 = vadd.f32 1.0, %v2500_v16 }
 0x27b   : > { %2505 = vrcp.f32 %v1127_v15 }
 0x27c   : > { %2507 = vrcp.f32 %v1134_v19 }
 0x284   : > { %v2504_v18 = vpop.eup %2503 }
 0x285   : > { %v2506_v24 = vpop.eup %2505  ;;  %v1138_v25 = vmul.f32 %v2504_v18, %v2502_v17 }
 0x286   : > { %v1137_v26 = vmul.f32 0.0, %v2506_v24  ;;  %v2508_v57 = vpop.eup %2507 }
 0x288   : > { %v3312_v27 = vadd.f32 %v1138_v25, %v1137_v26 }
 0x28a   : > { %2509 = vtanh.f32 %v3312_v27 }
 0x294   : > { %v2510_v58 = vpop.eup %2509 }
 0x295   : > { %v1141_v59 = vmul.f32 %v2510_v58, %v2508_v57 }
 0x297   : > { %1142 = vst [vmem:[#allocation3] sm:$0xff] %v1141_v59  ;;  %v1148_v60 = vpack.c.bf16 %v1141_v59, %v1141_v59 }
 0x299   : > { %1182 = vmatmul.mubr.bf16.vlgmr.msra.gmra.mrb[4].mxu0 %v1148_v60  ;;  %1223 = vmatmul.mubr.bf16.vlgmr.msra.gmra.mrb[4].mxu1 %v1148_v60 }
 0x29a   : > { %1268 = vmatpush1.bf16.msra.mxu0 %v3148_v21  ;;  %1309 = vmatpush1.bf16.msra.mxu1 %v3168_v31 }
 0x29b   : > { %1269 = vmatprep.subr.bf16.mxu0 %v3154_v23  ;;  %1310 = vmatprep.subr.bf16.mxu1 %v3181_v34 }
 0x29c   : > { %1299 = vmatprep.mubr.bf16.mxu0 %v2760_v22  ;;  %1340 = vmatprep.mubr.bf16.mxu1 %v2760_v22 }
 0x29e   : > { %1270 = vmatpush1.bf16.msra.mxu0 %v3158_v28  ;;  %1311 = vmatpush1.bf16.msra.mxu1 %v3184_v35 }
 0x29f   : > { %1271 = vmatprep.subr.bf16.mxu0 %v3162_v29  ;;  %1312 = vmatprep.subr.bf16.mxu1 %v3195_v38 }
 0x2a2   : > { %1272 = vmatpush1.bf16.msra.mxu0 %v3172_v32  ;;  %1313 = vmatpush1.bf16.msra.mxu1 %v3200_v39 }
 0x2a3   : > { %1273 = vmatprep.subr.bf16.mxu0 %v3177_v33  ;;  %1314 = vmatprep.subr.bf16.mxu1 %v3204_v40 }
 0x2a6   : > { %1274 = vmatpush1.bf16.msra.mxu0 %v3189_v36  ;;  %1315 = vmatpush1.bf16.msra.mxu1 %v3216_v43 }
 0x2a7   : > { %1275 = vmatprep.subr.bf16.mxu0 %v3192_v37  ;;  %1316 = vmatprep.subr.bf16.mxu1 %v3220_v44 }
 0x2aa   : > { %1276 = vmatpush1.bf16.msra.mxu0 %v3208_v41  ;;  %1317 = vmatpush1.bf16.msra.mxu1 %v3232_v47 }
 0x2ab   : > { %1277 = vmatprep.subr.bf16.mxu0 %v3212_v42  ;;  %1318 = vmatprep.subr.bf16.mxu1 %v3236_v48 }
 0x2ae   : > { %1278 = vmatpush1.bf16.msra.mxu0 %v3224_v45  ;;  %1319 = vmatpush1.bf16.msra.mxu1 %v3248_v51 }
 0x2af   : > { %1279 = vmatprep.subr.bf16.mxu0 %v3227_v46  ;;  %1320 = vmatprep.subr.bf16.mxu1 %v3252_v52 }
 0x2b2   : > { %1280 = vmatpush1.bf16.msra.mxu0 %v3240_v49  ;;  %1321 = vmatpush1.bf16.msra.mxu1 %v3261_v54 }
 0x2b3   : > { %1281 = vmatprep.subr.bf16.mxu0 %v3244_v50  ;;  %1322 = vmatprep.subr.bf16.mxu1 %v3265_v55 }
 0x2b6   : > { %1282 = vmatpush1.bf16.msra.mxu0 %v3256_v53  ;;  %1323 = vmatpush1.bf16.msra.mxu1 %v3270_v56 }
 0x2b7   : > { %1385 = vmatprep.subr.bf16.mxu0 %v3145_v20  ;;  %1426 = vmatprep.subr.bf16.mxu1 %v3165_v30 }
 0x36c   : > { %v1183_v63 = vpop.f32.mrb[4].mxu0  ;;  %v1224_v0 = vpop.f32.mrb[4].mxu1 }
 0x36d   : > { %v1231_v1 = vadd.f32 %v1183_v63, %v1144_v61  ;;  %v1185_v2 = vpop.f32.mrb[5].mxu0  ;;  %v1226_v3 = vpop.f32.mrb[5].mxu1  ;;  %v1233_v15 = vadd.f32 %v1224_v0, %v1146_v13 }
 0x36e   : > { %v1232_v4 = vadd.f32 %v1185_v2, %v1145_v62  ;;  %v1187_v5 = vpop.f32.mrb[6].mxu0  ;;  %v1228_v6 = vpop.f32.mrb[6].mxu1  ;;  %v1234_v12 = vadd.f32 %v1226_v3, %v1147_v11  ;;  %v1263_v2 = vld [vmem:[#allocation2 + $0x48] sm:$0xff] }
 0x36f   : > { %v2246_v7 = vmul.f32 -1.442695, %v1231_v1  ;;  %v1188_v8 = vpop.f32.mrb[7].mxu0  ;;  %v1229_v9 = vpop.f32.mrb[7].mxu1 }
 0x370   : > { %v2247_v10 = vmul.f32 -1.442695, %v1232_v4  ;;  %v2248_v14 = vmul.f32 -1.442695, %v1234_v12 }
 0x371   : > { %2511 = vpow2.f32 %v2246_v7 }
 0x372   : > { %2513 = vpow2.f32 %v2247_v10 }
 0x373   : > { %2515 = vpow2.f32 %v2248_v14 }
 0x374   : > { %2517 = vtanh.f32 %v1233_v15  ;;  %v1265_v15 = vld [vmem:[#allocation2 + $0x58] sm:$0xff] }
 0x37b   : > { %v2512_v16 = vpop.eup %2511 }
 0x37c   : > { %v2514_v17 = vpop.eup %2513  ;;  %v1238_v18 = vadd.f32 1.0, %v2512_v16 }
 0x37d   : > { %v1244_v19 = vadd.f32 1.0, %v2514_v17  ;;  %v2516_v24 = vpop.eup %2515  ;;  %v1264_v17 = vld [vmem:[#allocation2 + $0x50] sm:$0xff] }
 0x37e   : > { %2519 = vrcp.f32 %v1238_v18  ;;  %v2518_v25 = vpop.eup %2517  ;;  %v1251_v59 = vadd.f32 1.0, %v2516_v24 }
 0x37f   : > { %2521 = vrcp.f32 %v1244_v19 }
 0x380   : > { %2523 = vrcp.f32 %v1251_v59 }
 0x388   : > { %v2520_v26 = vpop.eup %2519 }
 0x389   : > { %v2522_v57 = vpop.eup %2521  ;;  %v1255_v58 = vmul.f32 %v2520_v26, %v2518_v25 }
 0x38a   : > { %v1254_v60 = vmul.f32 %v2522_v57, %v3312_v27  ;;  %v2524_v62 = vpop.eup %2523  ;;  %v1262_v27 = vld [vmem:[#allocation2 + $0x40] sm:$0xff] }
 0x38c   : > { %v3350_v61 = vadd.f32 %v1255_v58, %v1254_v60 }
 0x38e   : > { %2525 = vtanh.f32 %v3350_v61 }
 0x398   : > { %v2526_v63 = vpop.eup %2525 }
 0x399   : > { %v1258_v0 = vmul.f32 %v2526_v63, %v2524_v62 }
 0x39b   : > { %1260 = vst [vmem:[#allocation3 + $0x8] sm:$0xff] %v1258_v0  ;;  %v1266_v1 = vpack.c.bf16 %v1258_v0, %v1258_v0 }
 0x39d   : > { %1300 = vmatmul.mubr.bf16.vlgmr.msra.gmra.mrb[8].mxu0 %v1266_v1  ;;  %1341 = vmatmul.mubr.bf16.vlgmr.msra.gmra.mrb[8].mxu1 %v1266_v1 }
 0x39e   : > { %1386 = vmatpush1.bf16.msra.mxu0 %v3148_v21  ;;  %1427 = vmatpush1.bf16.msra.mxu1 %v3168_v31 }
 0x39f   : > { %1387 = vmatprep.subr.bf16.mxu0 %v3154_v23  ;;  %1428 = vmatprep.subr.bf16.mxu1 %v3181_v34 }
 0x3a0   : > { %1417 = vmatprep.mubr.bf16.mxu0 %v2760_v22  ;;  %1458 = vmatprep.mubr.bf16.mxu1 %v2760_v22 }
 0x3a2   : > { %1388 = vmatpush1.bf16.msra.mxu0 %v3158_v28  ;;  %1429 = vmatpush1.bf16.msra.mxu1 %v3184_v35 }
 0x3a3   : > { %1389 = vmatprep.subr.bf16.mxu0 %v3162_v29  ;;  %1430 = vmatprep.subr.bf16.mxu1 %v3195_v38 }
 0x3a6   : > { %1390 = vmatpush1.bf16.msra.mxu0 %v3172_v32  ;;  %1431 = vmatpush1.bf16.msra.mxu1 %v3200_v39 }
 0x3a7   : > { %1391 = vmatprep.subr.bf16.mxu0 %v3177_v33  ;;  %1432 = vmatprep.subr.bf16.mxu1 %v3204_v40 }
 0x3aa   : > { %1392 = vmatpush1.bf16.msra.mxu0 %v3189_v36  ;;  %1433 = vmatpush1.bf16.msra.mxu1 %v3216_v43 }
 0x3ab   : > { %1393 = vmatprep.subr.bf16.mxu0 %v3192_v37  ;;  %1434 = vmatprep.subr.bf16.mxu1 %v3220_v44 }
 0x3ae   : > { %1394 = vmatpush1.bf16.msra.mxu0 %v3208_v41  ;;  %1435 = vmatpush1.bf16.msra.mxu1 %v3232_v47 }
 0x3af   : > { %1395 = vmatprep.subr.bf16.mxu0 %v3212_v42  ;;  %1436 = vmatprep.subr.bf16.mxu1 %v3236_v48 }
 0x3b2   : > { %1396 = vmatpush1.bf16.msra.mxu0 %v3224_v45  ;;  %1437 = vmatpush1.bf16.msra.mxu1 %v3248_v51 }
 0x3b3   : > { %1397 = vmatprep.subr.bf16.mxu0 %v3227_v46  ;;  %1438 = vmatprep.subr.bf16.mxu1 %v3252_v52 }
 0x3b6   : > { %1398 = vmatpush1.bf16.msra.mxu0 %v3240_v49  ;;  %1439 = vmatpush1.bf16.msra.mxu1 %v3261_v54 }
 0x3b7   : > { %1399 = vmatprep.subr.bf16.mxu0 %v3244_v50  ;;  %1440 = vmatprep.subr.bf16.mxu1 %v3265_v55 }
 0x3ba   : > { %1400 = vmatpush1.bf16.msra.mxu0 %v3256_v53  ;;  %1441 = vmatpush1.bf16.msra.mxu1 %v3270_v56 }
 0x3bb   : > { %1503 = vmatprep.subr.bf16.mxu0 %v3145_v20  ;;  %1544 = vmatprep.subr.bf16.mxu1 %v3165_v30 }
 0x470   : > { %v1301_v3 = vpop.f32.mrb[8].mxu0  ;;  %v1342_v4 = vpop.f32.mrb[8].mxu1 }
 0x471   : > { %v1349_v5 = vadd.f32 %v1301_v3, %v1262_v27  ;;  %v1303_v6 = vpop.f32.mrb[9].mxu0  ;;  %v1344_v7 = vpop.f32.mrb[9].mxu1  ;;  %v1351_v19 = vadd.f32 %v1342_v4, %v1264_v17 }
 0x472   : > { %v1350_v8 = vadd.f32 %v1303_v6, %v1263_v2  ;;  %v1305_v9 = vpop.f32.mrb[10].mxu0  ;;  %v1346_v10 = vpop.f32.mrb[10].mxu1  ;;  %v1352_v16 = vadd.f32 %v1344_v7, %v1265_v15  ;;  %v1381_v6 = vld [vmem:[#allocation2 + $0x68] sm:$0xff] }
 0x473   : > { %v2249_v11 = vmul.f32 -1.442695, %v1349_v5  ;;  %v1306_v12 = vpop.f32.mrb[11].mxu0  ;;  %v1347_v13 = vpop.f32.mrb[11].mxu1 }
 0x474   : > { %v2250_v14 = vmul.f32 -1.442695, %v1350_v8  ;;  %v2251_v18 = vmul.f32 -1.442695, %v1352_v16 }
 0x475   : > { %2527 = vpow2.f32 %v2249_v11 }
 0x476   : > { %2529 = vpow2.f32 %v2250_v14 }
 0x477   : > { %2531 = vpow2.f32 %v2251_v18 }
 0x478   : > { %2533 = vtanh.f32 %v1351_v19  ;;  %v1383_v19 = vld [vmem:[#allocation2 + $0x78] sm:$0xff] }
 0x47f   : > { %v2528_v24 = vpop.eup %2527 }
 0x480   : > { %v2530_v25 = vpop.eup %2529  ;;  %v1356_v26 = vadd.f32 1.0, %v2528_v24 }
 0x481   : > { %v1362_v57 = vadd.f32 1.0, %v2530_v25  ;;  %v2532_v58 = vpop.eup %2531  ;;  %v1382_v25 = vld [vmem:[#allocation2 + $0x70] sm:$0xff] }
 0x482   : > { %2535 = vrcp.f32 %v1356_v26  ;;  %v2534_v59 = vpop.eup %2533  ;;  %v1369_v0 = vadd.f32 1.0, %v2532_v58 }
 0x483   : > { %2537 = vrcp.f32 %v1362_v57 }
 0x484   : > { %2539 = vrcp.f32 %v1369_v0 }
 0x48c   : > { %v2536_v60 = vpop.eup %2535 }
 0x48d   : > { %v2538_v62 = vpop.eup %2537  ;;  %v1373_v63 = vmul.f32 %v2536_v60, %v2534_v59 }
 0x48e   : > { %v1372_v1 = vmul.f32 %v2538_v62, %v3350_v61  ;;  %v2540_v2 = vpop.eup %2539  ;;  %v1380_v61 = vld [vmem:[#allocation2 + $0x60] sm:$0xff] }
 0x490   : > { %v3388_v27 = vadd.f32 %v1373_v63, %v1372_v1 }
 0x492   : > { %2541 = vtanh.f32 %v3388_v27 }
 0x49c   : > { %v2542_v3 = vpop.eup %2541 }
 0x49d   : > { %v1376_v4 = vmul.f32 %v2542_v3, %v2540_v2 }
 0x49f   : > { %1378 = vst [vmem:[#allocation3 + $0x10] sm:$0xff] %v1376_v4  ;;  %v1384_v5 = vpack.c.bf16 %v1376_v4, %v1376_v4 }
 0x4a1   : > { %1418 = vmatmul.mubr.bf16.vlgmr.msra.gmra.mrb[12].mxu0 %v1384_v5  ;;  %1459 = vmatmul.mubr.bf16.vlgmr.msra.gmra.mrb[12].mxu1 %v1384_v5 }
 0x4a2   : > { %1504 = vmatpush1.bf16.msra.mxu0 %v3148_v21  ;;  %1545 = vmatpush1.bf16.msra.mxu1 %v3168_v31 }
 0x4a3   : > { %1505 = vmatprep.subr.bf16.mxu0 %v3154_v23  ;;  %1546 = vmatprep.subr.bf16.mxu1 %v3181_v34 }
 0x4a4   : > { %1535 = vmatprep.mubr.bf16.mxu0 %v2760_v22  ;;  %1576 = vmatprep.mubr.bf16.mxu1 %v2760_v22 }
 0x4a6   : > { %1506 = vmatpush1.bf16.msra.mxu0 %v3158_v28  ;;  %1547 = vmatpush1.bf16.msra.mxu1 %v3184_v35 }
 0x4a7   : > { %1507 = vmatprep.subr.bf16.mxu0 %v3162_v29  ;;  %1548 = vmatprep.subr.bf16.mxu1 %v3195_v38 }
 0x4aa   : > { %1508 = vmatpush1.bf16.msra.mxu0 %v3172_v32  ;;  %1549 = vmatpush1.bf16.msra.mxu1 %v3200_v39 }
 0x4ab   : > { %1509 = vmatprep.subr.bf16.mxu0 %v3177_v33  ;;  %1550 = vmatprep.subr.bf16.mxu1 %v3204_v40 }
 0x4ae   : > { %1510 = vmatpush1.bf16.msra.mxu0 %v3189_v36  ;;  %1551 = vmatpush1.bf16.msra.mxu1 %v3216_v43 }
 0x4af   : > { %1511 = vmatprep.subr.bf16.mxu0 %v3192_v37  ;;  %1552 = vmatprep.subr.bf16.mxu1 %v3220_v44 }
 0x4b2   : > { %1512 = vmatpush1.bf16.msra.mxu0 %v3208_v41  ;;  %1553 = vmatpush1.bf16.msra.mxu1 %v3232_v47 }
 0x4b3   : > { %1513 = vmatprep.subr.bf16.mxu0 %v3212_v42  ;;  %1554 = vmatprep.subr.bf16.mxu1 %v3236_v48 }
 0x4b6   : > { %1514 = vmatpush1.bf16.msra.mxu0 %v3224_v45  ;;  %1555 = vmatpush1.bf16.msra.mxu1 %v3248_v51 }
 0x4b7   : > { %1515 = vmatprep.subr.bf16.mxu0 %v3227_v46  ;;  %1556 = vmatprep.subr.bf16.mxu1 %v3252_v52 }
 0x4ba   : > { %1516 = vmatpush1.bf16.msra.mxu0 %v3240_v49  ;;  %1557 = vmatpush1.bf16.msra.mxu1 %v3261_v54 }
 0x4bb   : > { %1517 = vmatprep.subr.bf16.mxu0 %v3244_v50  ;;  %1558 = vmatprep.subr.bf16.mxu1 %v3265_v55 }
 0x4be   : > { %1518 = vmatpush1.bf16.msra.mxu0 %v3256_v53  ;;  %1559 = vmatpush1.bf16.msra.mxu1 %v3270_v56 }
 0x4bf   : > { %1621 = vmatprep.subr.bf16.mxu0 %v3145_v20  ;;  %1662 = vmatprep.subr.bf16.mxu1 %v3165_v30 }
 0x574   : > { %v1419_v7 = vpop.f32.mrb[12].mxu0  ;;  %v1460_v8 = vpop.f32.mrb[12].mxu1 }
 0x575   : > { %v1467_v9 = vadd.f32 %v1419_v7, %v1380_v61  ;;  %v1421_v10 = vpop.f32.mrb[13].mxu0  ;;  %v1462_v11 = vpop.f32.mrb[13].mxu1  ;;  %v1469_v57 = vadd.f32 %v1460_v8, %v1382_v25 }
 0x576   : > { %v1468_v12 = vadd.f32 %v1421_v10, %v1381_v6  ;;  %v1423_v13 = vpop.f32.mrb[14].mxu0  ;;  %v1464_v14 = vpop.f32.mrb[14].mxu1  ;;  %v1470_v24 = vadd.f32 %v1462_v11, %v1383_v19  ;;  %v1499_v10 = vld [vmem:[#allocation2 + $0x88] sm:$0xff] }
 0x577   : > { %v2252_v15 = vmul.f32 -1.442695, %v1467_v9  ;;  %v1424_v16 = vpop.f32.mrb[15].mxu0  ;;  %v1465_v17 = vpop.f32.mrb[15].mxu1 }
 0x578   : > { %v2253_v18 = vmul.f32 -1.442695, %v1468_v12  ;;  %v2254_v26 = vmul.f32 -1.442695, %v1470_v24 }
 0x579   : > { %2543 = vpow2.f32 %v2252_v15 }
 0x57a   : > { %2545 = vpow2.f32 %v2253_v18 }
 0x57b   : > { %2547 = vpow2.f32 %v2254_v26 }
 0x57c   : > { %2549 = vtanh.f32 %v1469_v57  ;;  %v1501_v57 = vld [vmem:[#allocation2 + $0x98] sm:$0xff] }
 0x583   : > { %v2544_v58 = vpop.eup %2543 }
 0x584   : > { %v2546_v59 = vpop.eup %2545  ;;  %v1474_v60 = vadd.f32 1.0, %v2544_v58  ;;  %v1500_v58 = vld [vmem:[#allocation2 + $0x90] sm:$0xff] }
 0x585   : > { %v1480_v62 = vadd.f32 1.0, %v2546_v59  ;;  %v2548_v63 = vpop.eup %2547 }
 0x586   : > { %2551 = vrcp.f32 %v1474_v60  ;;  %v2550_v0 = vpop.eup %2549  ;;  %v1487_v4 = vadd.f32 1.0, %v2548_v63 }
 0x587   : > { %2553 = vrcp.f32 %v1480_v62 }
 0x588   : > { %2555 = vrcp.f32 %v1487_v4 }
 0x590   : > { %v2552_v1 = vpop.eup %2551 }
 0x591   : > { %v2554_v2 = vpop.eup %2553  ;;  %v1491_v3 = vmul.f32 %v2552_v1, %v2550_v0 }
 0x592   : > { %v1490_v5 = vmul.f32 %v2554_v2, %v3388_v27  ;;  %v2556_v6 = vpop.eup %2555  ;;  %v1498_v27 = vld [vmem:[#allocation2 + $0x80] sm:$0xff] }
 0x594   : > { %v3426_v61 = vadd.f32 %v1491_v3, %v1490_v5 }
 0x596   : > { %2557 = vtanh.f32 %v3426_v61 }
 0x5a0   : > { %v2558_v7 = vpop.eup %2557 }
 0x5a1   : > { %v1494_v8 = vmul.f32 %v2558_v7, %v2556_v6 }
 0x5a3   : > { %1496 = vst [vmem:[#allocation3 + $0x18] sm:$0xff] %v1494_v8  ;;  %v1502_v9 = vpack.c.bf16 %v1494_v8, %v1494_v8 }
 0x5a5   : > { %1536 = vmatmul.mubr.bf16.vlgmr.msra.gmra.mrb[16].mxu0 %v1502_v9  ;;  %1577 = vmatmul.mubr.bf16.vlgmr.msra.gmra.mrb[16].mxu1 %v1502_v9 }
 0x5a6   : > { %1622 = vmatpush1.bf16.msra.mxu0 %v3148_v21  ;;  %1663 = vmatpush1.bf16.msra.mxu1 %v3168_v31 }
 0x5a7   : > { %1623 = vmatprep.subr.bf16.mxu0 %v3154_v23  ;;  %1664 = vmatprep.subr.bf16.mxu1 %v3181_v34 }
 0x5a8   : > { %1653 = vmatprep.mubr.bf16.mxu0 %v2760_v22  ;;  %1694 = vmatprep.mubr.bf16.mxu1 %v2760_v22 }
 0x5aa   : > { %1624 = vmatpush1.bf16.msra.mxu0 %v3158_v28  ;;  %1665 = vmatpush1.bf16.msra.mxu1 %v3184_v35 }
 0x5ab   : > { %1625 = vmatprep.subr.bf16.mxu0 %v3162_v29  ;;  %1666 = vmatprep.subr.bf16.mxu1 %v3195_v38 }
 0x5ae   : > { %1626 = vmatpush1.bf16.msra.mxu0 %v3172_v32  ;;  %1667 = vmatpush1.bf16.msra.mxu1 %v3200_v39 }
 0x5af   : > { %1627 = vmatprep.subr.bf16.mxu0 %v3177_v33  ;;  %1668 = vmatprep.subr.bf16.mxu1 %v3204_v40 }
 0x5b2   : > { %1628 = vmatpush1.bf16.msra.mxu0 %v3189_v36  ;;  %1669 = vmatpush1.bf16.msra.mxu1 %v3216_v43 }
 0x5b3   : > { %1629 = vmatprep.subr.bf16.mxu0 %v3192_v37  ;;  %1670 = vmatprep.subr.bf16.mxu1 %v3220_v44 }
 0x5b6   : > { %1630 = vmatpush1.bf16.msra.mxu0 %v3208_v41  ;;  %1671 = vmatpush1.bf16.msra.mxu1 %v3232_v47 }
 0x5b7   : > { %1631 = vmatprep.subr.bf16.mxu0 %v3212_v42  ;;  %1672 = vmatprep.subr.bf16.mxu1 %v3236_v48 }
 0x5ba   : > { %1632 = vmatpush1.bf16.msra.mxu0 %v3224_v45  ;;  %1673 = vmatpush1.bf16.msra.mxu1 %v3248_v51 }
 0x5bb   : > { %1633 = vmatprep.subr.bf16.mxu0 %v3227_v46  ;;  %1674 = vmatprep.subr.bf16.mxu1 %v3252_v52 }
 0x5be   : > { %1634 = vmatpush1.bf16.msra.mxu0 %v3240_v49  ;;  %1675 = vmatpush1.bf16.msra.mxu1 %v3261_v54 }
 0x5bf   : > { %1635 = vmatprep.subr.bf16.mxu0 %v3244_v50  ;;  %1676 = vmatprep.subr.bf16.mxu1 %v3265_v55 }
 0x5c2   : > { %1636 = vmatpush1.bf16.msra.mxu0 %v3256_v53  ;;  %1677 = vmatpush1.bf16.msra.mxu1 %v3270_v56 }
 0x5c3   : > { %1739 = vmatprep.subr.bf16.mxu0 %v3145_v20  ;;  %1780 = vmatprep.subr.bf16.mxu1 %v3165_v30 }
 0x678   : > { %v1537_v11 = vpop.f32.mrb[16].mxu0  ;;  %v1578_v12 = vpop.f32.mrb[16].mxu1 }
 0x679   : > { %v1585_v13 = vadd.f32 %v1537_v11, %v1498_v27  ;;  %v1539_v14 = vpop.f32.mrb[17].mxu0  ;;  %v1580_v15 = vpop.f32.mrb[17].mxu1  ;;  %v1587_v59 = vadd.f32 %v1578_v12, %v1500_v58  ;;  %v2632_v58 = vld [vmem:[%s2947_s15 + $0x4c] ss:$16 sps:$4 sm:$0xff]  }
 0x67a   : > { %v1586_v16 = vadd.f32 %v1539_v14, %v1499_v10  ;;  %v1541_v17 = vpop.f32.mrb[18].mxu0  ;;  %v1582_v18 = vpop.f32.mrb[18].mxu1  ;;  %v1588_v20 = vadd.f32 %v1580_v15, %v1501_v57  ;;  %v2630_v57 = vld [vmem:[%s2947_s15 + $0x28] ss:$16 sps:$4 sm:$0xff]  }
 0x67b   : > { %v2255_v19 = vmul.f32 -1.442695, %v1585_v13  ;;  %v1542_v24 = vpop.f32.mrb[19].mxu0  ;;  %v1583_v25 = vpop.f32.mrb[19].mxu1  ;;  %v2625_v18 = vld [vmem:[%s2947_s15] ss:$16 sps:$4 sm:$0xff]  }
 0x67c   : > { %v2256_v26 = vmul.f32 -1.442695, %v1586_v16  ;;  %v2257_v30 = vmul.f32 -1.442695, %v1588_v20  ;;  %v2627_v24 = vld [vmem:[%s2947_s15 + $0x24] ss:$16 sps:$4 sm:$0xff]  }
 0x67d   : > { %2559 = vpow2.f32 %v2255_v19  ;;  %v2626_v19 = vld [vmem:[%s2947_s15 + $0x8] ss:$16 sps:$4 sm:$0xff]   ;;  %v2628_v25 = vld [vmem:[%s2947_s15 + $0x2c] ss:$16 sps:$4 sm:$0xff]   ;;  %v2631_v20 = vld [vmem:[%s2947_s15 + $0x44] ss:$16 sps:$4 sm:$0xff]  }
 0x67e   : > { %2561 = vpow2.f32 %v2256_v26  ;;  %v2629_v26 = vld [vmem:[%s2947_s15 + $0x20] ss:$16 sps:$4 sm:$0xff]  }
 0x67f   : > { %2563 = vpow2.f32 %v2257_v30  ;;  %v2633_v30 = vld [vmem:[%s2947_s15 + $0x40] ss:$16 sps:$4 sm:$0xff]  }
 0x680   : > { %2565 = vtanh.f32 %v1587_v59  ;;  %v2634_v59 = vld [vmem:[%s2947_s15 + $0x48] ss:$16 sps:$4 sm:$0xff]  }
 0x687   : > { %v2560_v60 = vpop.eup %2559 }
 0x688   : > { %v2562_v62 = vpop.eup %2561  ;;  %v1592_v63 = vadd.f32 1.0, %v2560_v60  ;;  %v2635_v60 = vld [vmem:[%s2947_s15 + $0x64] ss:$16 sps:$4 sm:$0xff]  }
 0x689   : > { %v1598_v0 = vadd.f32 1.0, %v2562_v62  ;;  %v2564_v1 = vpop.eup %2563  ;;  %v2637_v62 = vld [vmem:[%s2947_s15 + $0x60] ss:$16 sps:$4 sm:$0xff]  }
 0x68a   : > { %2567 = vrcp.f32 %v1592_v63  ;;  %v2566_v2 = vpop.eup %2565  ;;  %v1605_v6 = vadd.f32 1.0, %v2564_v1  ;;  %v2638_v63 = vld [vmem:[%s2947_s15 + $0x68] ss:$16 sps:$4 sm:$0xff]   ;;  %v2640_v1 = vld [vmem:[%s2947_s15 + $0x8c] ss:$16 sps:$4 sm:$0xff]  }
 0x68b   : > { %2569 = vrcp.f32 %v1598_v0  ;;  %v2639_v0 = vld [vmem:[%s2947_s15 + $0x84] ss:$16 sps:$4 sm:$0xff]  }
 0x68c   : > { %2571 = vrcp.f32 %v1605_v6  ;;  %v2645_v6 = vld [vmem:[%s2947_s15 + $0xa0] ss:$16 sps:$4 sm:$0xff]  }
 0x694   : > { %v2568_v3 = vpop.eup %2567 }
 0x695   : > { %v2570_v4 = vpop.eup %2569  ;;  %v1609_v5 = vmul.f32 %v2568_v3, %v2566_v2  ;;  %v2641_v2 = vld [vmem:[%s2947_s15 + $0x80] ss:$16 sps:$4 sm:$0xff]   ;;  %v2642_v3 = vld [vmem:[%s2947_s15 + $0x88] ss:$16 sps:$4 sm:$0xff]  }
 0x696   : > { %v1608_v7 = vmul.f32 %v2570_v4, %v3426_v61  ;;  %v2572_v9 = vpop.eup %2571  ;;  %v2643_v4 = vld [vmem:[%s2947_s15 + $0xa4] ss:$16 sps:$4 sm:$0xff]  }
 0x698   : > { %v3464_v8 = vadd.f32 %v1609_v5, %v1608_v7  ;;  %v2644_v5 = vld [vmem:[%s2947_s15 + $0xac] ss:$16 sps:$4 sm:$0xff]   ;;  %v2646_v7 = vld [vmem:[%s2947_s15 + $0xa8] ss:$16 sps:$4 sm:$0xff]  }
 0x69a   : > { %2573 = vtanh.f32 %v3464_v8 }
 0x6a4   : > { %v2574_v27 = vpop.eup %2573 }
 0x6a5   : > { %v1612_v10 = vmul.f32 %v2574_v27, %v2572_v9  ;;  %v2648_v9 = vld [vmem:[%s2947_s15 + $0xcc] ss:$16 sps:$4 sm:$0xff]   ;;  %v2649_v27 = vld [vmem:[%s2947_s15 + $0xc0] ss:$16 sps:$4 sm:$0xff]  }
 0x6a7   : > { %1614 = vst [vmem:[#allocation3 + $0x20] sm:$0xff] %v1612_v10  ;;  %v1620_v11 = vpack.c.bf16 %v1612_v10, %v1612_v10  ;;  %v2650_v10 = vld [vmem:[%s2947_s15 + $0xc8] ss:$16 sps:$4 sm:$0xff]  }
 0x6a9   : > { %1654 = vmatmul.mubr.bf16.vlgmr.msra.gmra.mrb[20].mxu0 %v1620_v11  ;;  %1695 = vmatmul.mubr.bf16.vlgmr.msra.gmra.mrb[20].mxu1 %v1620_v11  ;;  %v2651_v11 = vld [vmem:[%s2947_s15 + $0xe4] ss:$16 sps:$4 sm:$0xff]  }
 0x6aa   : > { %1740 = vmatpush1.bf16.msra.mxu0 %v3148_v21  ;;  %1781 = vmatpush1.bf16.msra.mxu1 %v3168_v31  ;;  %v2623_v21 = vld [vmem:[%s2947_s15 + $0x4] ss:$16 sps:$4 sm:$0xff]  }
 0x6ab   : > { %1741 = vmatprep.subr.bf16.mxu0 %v3154_v23  ;;  %1782 = vmatprep.subr.bf16.mxu1 %v3181_v34  ;;  %v2624_v23 = vld [vmem:[%s2947_s15 + $0xc] ss:$16 sps:$4 sm:$0xff]  }
 0x6ac   : > { %1771 = vmatprep.mubr.bf16.mxu0 %v2760_v22  ;;  %1812 = vmatprep.mubr.bf16.mxu1 %v2760_v22 }
 0x6ae   : > { %1742 = vmatpush1.bf16.msra.mxu0 %v3158_v28  ;;  %1783 = vmatpush1.bf16.msra.mxu1 %v3184_v35  ;;  %v1616_v28 = vld [vmem:[#allocation2 + $0xa0] sm:$0xff] }
 0x6af   : > { %1743 = vmatprep.subr.bf16.mxu0 %v3162_v29  ;;  %1784 = vmatprep.subr.bf16.mxu1 %v3195_v38  ;;  %v1617_v29 = vld [vmem:[#allocation2 + $0xa8] sm:$0xff] }
 0x6b2   : > { %1744 = vmatpush1.bf16.msra.mxu0 %v3172_v32  ;;  %1785 = vmatpush1.bf16.msra.mxu1 %v3200_v39 }
 0x6b3   : > { %1745 = vmatprep.subr.bf16.mxu0 %v3177_v33  ;;  %1786 = vmatprep.subr.bf16.mxu1 %v3204_v40 }
 0x6b6   : > { %1746 = vmatpush1.bf16.msra.mxu0 %v3189_v36  ;;  %1787 = vmatpush1.bf16.msra.mxu1 %v3216_v43  ;;  %v1619_v43 = vld [vmem:[#allocation2 + $0xb8] sm:$0xff] }
 0x6b7   : > { %1747 = vmatprep.subr.bf16.mxu0 %v3192_v37  ;;  %1788 = vmatprep.subr.bf16.mxu1 %v3220_v44 }
 0x6ba   : > { %1748 = vmatpush1.bf16.msra.mxu0 %v3208_v41  ;;  %1789 = vmatpush1.bf16.msra.mxu1 %v3232_v47 }
 0x6bb   : > { %1749 = vmatprep.subr.bf16.mxu0 %v3212_v42  ;;  %1790 = vmatprep.subr.bf16.mxu1 %v3236_v48 }
 0x6be   : > { %1750 = vmatpush1.bf16.msra.mxu0 %v3224_v45  ;;  %1791 = vmatpush1.bf16.msra.mxu1 %v3248_v51  ;;  %v1618_v45 = vld [vmem:[#allocation2 + $0xb0] sm:$0xff] }
 0x6bf   : > { %1751 = vmatprep.subr.bf16.mxu0 %v3227_v46  ;;  %1792 = vmatprep.subr.bf16.mxu1 %v3252_v52 }
 0x6c2   : > { %1752 = vmatpush1.bf16.msra.mxu0 %v3240_v49  ;;  %1793 = vmatpush1.bf16.msra.mxu1 %v3261_v54 }
 0x6c3   : > { %1753 = vmatprep.subr.bf16.mxu0 %v3244_v50  ;;  %1794 = vmatprep.subr.bf16.mxu1 %v3265_v55 }
 0x6c6   : > { %1754 = vmatpush1.bf16.msra.mxu0 %v3256_v53  ;;  %1795 = vmatpush1.bf16.msra.mxu1 %v3270_v56 }
 0x6c7   : > { %1857 = vmatprep.subr.bf16.mxu0 %v2623_v21  ;;  %1898 = vmatprep.subr.bf16.mxu1 %v2624_v23  ;;  %v2652_v21 = vld [vmem:[%s2947_s15 + $0xec] ss:$16 sps:$4 sm:$0xff]   ;;  %v2653_v23 = vld [vmem:[%s2947_s15 + $0xe0] ss:$16 sps:$4 sm:$0xff]  }
 0x77c   : > { %v1655_v31 = vpop.f32.mrb[20].mxu0  ;;  %v1696_v32 = vpop.f32.mrb[20].mxu1 }
 0x77d   : > { %v1703_v33 = vadd.f32 %v1655_v31, %v1616_v28  ;;  %v1657_v34 = vpop.f32.mrb[21].mxu0  ;;  %v1698_v35 = vpop.f32.mrb[21].mxu1  ;;  %v1705_v47 = vadd.f32 %v1696_v32, %v1618_v45  ;;  %v2654_v28 = vld [vmem:[%s2947_s15 + $0xe8] ss:$16 sps:$4 sm:$0xff]  }
 0x77e   : > { %v1704_v36 = vadd.f32 %v1657_v34, %v1617_v29  ;;  %v1659_v37 = vpop.f32.mrb[22].mxu0  ;;  %v1700_v38 = vpop.f32.mrb[22].mxu1  ;;  %v1706_v44 = vadd.f32 %v1698_v35, %v1619_v43  ;;  %v1734_v29 = vld [vmem:[#allocation2 + $0xc0] sm:$0xff]  ;;  %v1735_v31 = vld [vmem:[#allocation2 + $0xc8] sm:$0xff] }
 0x77f   : > { %v2258_v39 = vmul.f32 -1.442695, %v1703_v33  ;;  %v1660_v40 = vpop.f32.mrb[23].mxu0  ;;  %v1701_v41 = vpop.f32.mrb[23].mxu1 }
 0x780   : > { %v2259_v42 = vmul.f32 -1.442695, %v1704_v36  ;;  %v2260_v46 = vmul.f32 -1.442695, %v1706_v44  ;;  %v1737_v44 = vld [vmem:[#allocation2 + $0xd8] sm:$0xff] }
 0x781   : > { %2575 = vpow2.f32 %v2258_v39 }
 0x782   : > { %2577 = vpow2.f32 %v2259_v42 }
 0x783   : > { %2579 = vpow2.f32 %v2260_v46  ;;  %v1736_v46 = vld [vmem:[#allocation2 + $0xd0] sm:$0xff] }
 0x784   : > { %2581 = vtanh.f32 %v1705_v47 }
 0x78b   : > { %v2576_v48 = vpop.eup %2575 }
 0x78c   : > { %v2578_v49 = vpop.eup %2577  ;;  %v1710_v50 = vadd.f32 1.0, %v2576_v48 }
 0x78d   : > { %v1716_v51 = vadd.f32 1.0, %v2578_v49  ;;  %v2580_v52 = vpop.eup %2579 }
 0x78e   : > { %2583 = vrcp.f32 %v1710_v50  ;;  %v2582_v53 = vpop.eup %2581  ;;  %v1723_v61 = vadd.f32 1.0, %v2580_v52 }
 0x78f   : > { %2585 = vrcp.f32 %v1716_v51 }
 0x790   : > { %2587 = vrcp.f32 %v1723_v61 }
 0x798   : > { %v2584_v54 = vpop.eup %2583 }
 0x799   : > { %v2586_v55 = vpop.eup %2585  ;;  %v1727_v56 = vmul.f32 %v2584_v54, %v2582_v53 }
 0x79a   : > { %v1726_v12 = vmul.f32 %v2586_v55, %v3464_v8  ;;  %v2588_v14 = vpop.eup %2587  ;;  %v2647_v8 = vld [vmem:[%s2947_s15 + $0xc4] ss:$16 sps:$4 sm:$0xff]  }
 0x79c   : > { %v3502_v13 = vadd.f32 %v1727_v56, %v1726_v12 }
 0x79e   : > { %2589 = vtanh.f32 %v3502_v13 }
 0x7a8   : > { %v2590_v15 = vpop.eup %2589 }
 0x7a9   : > { %v1730_v16 = vmul.f32 %v2590_v15, %v2588_v14 }
 0x7ab   : > { %1732 = vst [vmem:[#allocation3 + $0x28] sm:$0xff] %v1730_v16  ;;  %v1738_v17 = vpack.c.bf16 %v1730_v16, %v1730_v16 }
 0x7ad   : > { %1772 = vmatmul.mubr.bf16.vlgmr.msra.gmra.mrb[24].mxu0 %v1738_v17  ;;  %1813 = vmatmul.mubr.bf16.vlgmr.msra.gmra.mrb[24].mxu1 %v1738_v17 }
 0x7ae   : > { %1858 = vmatpush1.bf16.msra.mxu0 %v2625_v18  ;;  %1899 = vmatpush1.bf16.msra.mxu1 %v2626_v19 }
 0x7af   : > { %1859 = vmatprep.subr.bf16.mxu0 %v2627_v24  ;;  %1900 = vmatprep.subr.bf16.mxu1 %v2628_v25  ;;  %v1969_v24 = vld [vmem:[%s3611_s4] sm:$0xff] }
 0x7b0   : > { %1889 = vmatprep.mubr.bf16.mxu0 %v2760_v22  ;;  %1930 = vmatprep.mubr.bf16.mxu1 %v2760_v22  ;;  %v2636_v22 = vld [vmem:[%s2947_s15 + $0x6c] ss:$16 sps:$4 sm:$0xff]  }
 0x7b2   : > { %1860 = vmatpush1.bf16.msra.mxu0 %v2629_v26  ;;  %1901 = vmatpush1.bf16.msra.mxu1 %v2630_v57  ;;  %v2761_v26 = vmov 0.0|0.0   ;;  %v1971_v57 = vld [vmem:[%s3611_s4 + $0x10] sm:$0xff] }
 0x7b3   : > { %1861 = vmatprep.subr.bf16.mxu0 %v2631_v20  ;;  %1902 = vmatprep.subr.bf16.mxu1 %v2632_v58  ;;  %v1972_v20 = vld [vmem:[%s3611_s4 + $0x18] sm:$0xff] }
 0x7b4   : > { %v2328_v58 = vpack.c.bf16 %v1972_v20, %v1971_v57 }
 0x7b6   : > { %1862 = vmatpush1.bf16.msra.mxu0 %v2633_v30  ;;  %1903 = vmatpush1.bf16.msra.mxu1 %v2634_v59  ;;  %v1973_v30 = vld [vmem:[%s3611_s4 + $0x20] sm:$0xff]  ;;  %v1974_v59 = vld [vmem:[%s3611_s4 + $0x28] sm:$0xff] }
 0x7b7   : > { %1863 = vmatprep.subr.bf16.mxu0 %v2635_v60  ;;  %1904 = vmatprep.subr.bf16.mxu1 %v2636_v22  ;;  %v2331_v60 = vpack.c.bf16 %v1974_v59, %v1973_v30  ;;  %v1975_v22 = vld [vmem:[%s3611_s4 + $0x30] sm:$0xff] }
 0x7ba   : > { %1864 = vmatpush1.bf16.msra.mxu0 %v2637_v62  ;;  %1905 = vmatpush1.bf16.msra.mxu1 %v2638_v63  ;;  %v1976_v62 = vld [vmem:[%s3611_s4 + $0x38] sm:$0xff] }
 0x7bb   : > { %1865 = vmatprep.subr.bf16.mxu0 %v2639_v0  ;;  %1906 = vmatprep.subr.bf16.mxu1 %v2640_v1  ;;  %v2334_v63 = vpack.c.bf16 %v1976_v62, %v1975_v22  ;;  %v1977_v0 = vld [vmem:[%s3611_s4 + $0x40] sm:$0xff]  ;;  %v1978_v1 = vld [vmem:[%s3611_s4 + $0x48] sm:$0xff] }
 0x7be   : > { %1866 = vmatpush1.bf16.msra.mxu0 %v2641_v2  ;;  %1907 = vmatpush1.bf16.msra.mxu1 %v2642_v3  ;;  %v2337_v2 = vpack.c.bf16 %v1978_v1, %v1977_v0  ;;  %v1979_v3 = vld [vmem:[%s3611_s4 + $0x50] sm:$0xff] }
 0x7bf   : > { %1867 = vmatprep.subr.bf16.mxu0 %v2643_v4  ;;  %1908 = vmatprep.subr.bf16.mxu1 %v2644_v5  ;;  %v1980_v4 = vld [vmem:[%s3611_s4 + $0x58] sm:$0xff]  ;;  %v1981_v5 = vld [vmem:[%s3611_s4 + $0x60] sm:$0xff] }
 0x7c2   : > { %1868 = vmatpush1.bf16.msra.mxu0 %v2645_v6  ;;  %1909 = vmatpush1.bf16.msra.mxu1 %v2646_v7  ;;  %v2340_v6 = vpack.c.bf16 %v1980_v4, %v1979_v3  ;;  %v1982_v7 = vld [vmem:[%s3611_s4 + $0x68] sm:$0xff] }
 0x7c3   : > { %1869 = vmatprep.subr.bf16.mxu0 %v2647_v8  ;;  %1910 = vmatprep.subr.bf16.mxu1 %v2648_v9  ;;  %v2763_v8 = vmov 0.0   ;;  %v2343_v9 = vpack.c.bf16 %v1982_v7, %v1981_v5 }
 0x7c6   : > { %1870 = vmatpush1.bf16.msra.mxu0 %v2649_v27  ;;  %1911 = vmatpush1.bf16.msra.mxu1 %v2650_v10  ;;  %v1983_v27 = vld [vmem:[%s3611_s4 + $0x70] sm:$0xff]  ;;  %v1984_v10 = vld [vmem:[%s3611_s4 + $0x78] sm:$0xff] }
 0x7c7   : > { %1871 = vmatprep.subr.bf16.mxu0 %v2651_v11  ;;  %1912 = vmatprep.subr.bf16.mxu1 %v2652_v21  ;;  %v2346_v11 = vpack.c.bf16 %v1984_v10, %v1983_v27  ;;  %v1852_v21 = vld [vmem:[#allocation2 + $0xe0] sm:$0xff] }
 0x7ca   : > { %1872 = vmatpush1.bf16.msra.mxu0 %v2653_v23  ;;  %1913 = vmatpush1.bf16.msra.mxu1 %v2654_v28  ;;  %v1853_v23 = vld [vmem:[#allocation2 + $0xe8] sm:$0xff] }
 0x7cb   : > { %2324 = vmatprep.subr.bf16.mxu0 %v2761_v26 }
 0x880   : > { %v1773_v32 = vpop.f32.mrb[24].mxu0  ;;  %v1814_v33 = vpop.f32.mrb[24].mxu1 }
 0x881   : > { %v1821_v34 = vadd.f32 %v1773_v32, %v1734_v29  ;;  %v1775_v35 = vpop.f32.mrb[25].mxu0  ;;  %v1816_v36 = vpop.f32.mrb[25].mxu1  ;;  %v1823_v48 = vadd.f32 %v1814_v33, %v1736_v46 }
 0x882   : > { %v1822_v37 = vadd.f32 %v1775_v35, %v1735_v31  ;;  %v1777_v38 = vpop.f32.mrb[26].mxu0  ;;  %v1818_v39 = vpop.f32.mrb[26].mxu1  ;;  %v1824_v45 = vadd.f32 %v1816_v36, %v1737_v44 }
 0x883   : > { %v2261_v40 = vmul.f32 -1.442695, %v1821_v34  ;;  %v1778_v41 = vpop.f32.mrb[27].mxu0  ;;  %v1819_v42 = vpop.f32.mrb[27].mxu1 }
 0x884   : > { %v2262_v43 = vmul.f32 -1.442695, %v1822_v37  ;;  %v2263_v47 = vmul.f32 -1.442695, %v1824_v45  ;;  %v1855_v41 = vld [vmem:[#allocation2 + $0xf8] sm:$0xff] }
 0x885   : > { %2591 = vpow2.f32 %v2261_v40 }
 0x886   : > { %2593 = vpow2.f32 %v2262_v43  ;;  %v1854_v43 = vld [vmem:[#allocation2 + $0xf0] sm:$0xff] }
 0x887   : > { %2595 = vpow2.f32 %v2263_v47 }
 0x888   : > { %2597 = vtanh.f32 %v1823_v48 }
 0x88f   : > { %v2592_v49 = vpop.eup %2591 }
 0x890   : > { %v2594_v50 = vpop.eup %2593  ;;  %v1828_v51 = vadd.f32 1.0, %v2592_v49 }
 0x891   : > { %v1834_v52 = vadd.f32 1.0, %v2594_v50  ;;  %v2596_v53 = vpop.eup %2595 }
 0x892   : > { %2599 = vrcp.f32 %v1828_v51  ;;  %v2598_v54 = vpop.eup %2597  ;;  %v1841_v12 = vadd.f32 1.0, %v2596_v53 }
 0x893   : > { %2601 = vrcp.f32 %v1834_v52 }
 0x894   : > { %2603 = vrcp.f32 %v1841_v12 }
 0x89c   : > { %v2600_v55 = vpop.eup %2599 }
 0x89d   : > { %v2602_v56 = vpop.eup %2601  ;;  %v1845_v61 = vmul.f32 %v2600_v55, %v2598_v54 }
 0x89e   : > { %v1844_v14 = vmul.f32 %v2602_v56, %v3502_v13  ;;  %v2604_v16 = vpop.eup %2603  ;;  %v1970_v13 = vld [vmem:[%s3611_s4 + $0x8] sm:$0xff] }
 0x89f   : > { %v2325_v25 = vpack.c.bf16 %v1970_v13, %v1969_v24 }
 0x8a0   : > { %v3538_v15 = vadd.f32 %v1845_v61, %v1844_v14 }
 0x8a2   : > { %2605 = vtanh.f32 %v3538_v15 }
 0x8ac   : > { %v2606_v17 = vpop.eup %2605 }
 0x8ad   : > { %v1848_v18 = vmul.f32 %v2606_v17, %v2604_v16  ;;  %v2267_v17 = vld [vmem:[%s3612_s5] ss:$0 sm:$0xff] }
 0x8af   : > { %1850 = vst [vmem:[#allocation3 + $0x30] sm:$0xff] %v1848_v18  ;;  %v1856_v19 = vpack.c.bf16 %v1848_v18, %v1848_v18 }
 0x8b1   : > { %1890 = vmatmul.mubr.bf16.vlgmr.msra.gmra.mrb[28].mxu0 %v1856_v19  ;;  %1931 = vmatmul.mubr.bf16.vlgmr.msra.gmra.mrb[28].mxu1 %v1856_v19 }
 0x8b2   : > { %2326 = vmatpush3.bf16.msra.mxu0 %v2325_v25  ;;  %2321 = vmatprep.mubr.msk.f32.mxu0 %vm2762_vm0, %v2763_v8 }
 0x8b3   : > { %2327 = vmatprep.subr.bf16.mxu0 %v2761_v26 }
 0x8b6   : > { %2329 = vmatpush3.bf16.msra.mxu0 %v2328_v58 }
 0x8b7   : > { %2330 = vmatprep.subr.bf16.mxu0 %v2761_v26 }
 0x8ba   : > { %2332 = vmatpush3.bf16.msra.mxu0 %v2331_v60 }
 0x8bb   : > { %2333 = vmatprep.subr.bf16.mxu0 %v2761_v26 }
 0x8be   : > { %2335 = vmatpush3.bf16.msra.mxu0 %v2334_v63 }
 0x8bf   : > { %2336 = vmatprep.subr.bf16.mxu0 %v2761_v26 }
 0x8c2   : > { %2338 = vmatpush3.bf16.msra.mxu0 %v2337_v2 }
 0x8c3   : > { %2339 = vmatprep.subr.bf16.mxu0 %v2761_v26 }
 0x8c6   : > { %2341 = vmatpush3.bf16.msra.mxu0 %v2340_v6 }
 0x8c7   : > { %2342 = vmatprep.subr.bf16.mxu0 %v2761_v26 }
 0x8ca   : > { %2344 = vmatpush3.bf16.msra.mxu0 %v2343_v9 }
 0x8cb   : > { %2345 = vmatprep.subr.bf16.mxu0 %v2761_v26 }
 0x8ce   : > { %2347 = vmatpush3.bf16.msra.mxu0 %v2346_v11 }
 0x984   : > { %v1891_v28 = vpop.f32.mrb[28].mxu0  ;;  %v1932_v29 = vpop.f32.mrb[28].mxu1 }
 0x985   : > { %v1939_v31 = vadd.f32 %v1891_v28, %v1852_v21  ;;  %v1893_v32 = vpop.f32.mrb[29].mxu0  ;;  %v1934_v33 = vpop.f32.mrb[29].mxu1  ;;  %v1941_v45 = vadd.f32 %v1932_v29, %v1854_v43 }
 0x986   : > { %v1940_v34 = vadd.f32 %v1893_v32, %v1853_v23  ;;  %v1895_v35 = vpop.f32.mrb[30].mxu0  ;;  %v1936_v36 = vpop.f32.mrb[30].mxu1  ;;  %v1942_v42 = vadd.f32 %v1934_v33, %v1855_v41 }
 0x987   : > { %v2264_v37 = vmul.f32 -1.442695, %v1939_v31  ;;  %v1896_v38 = vpop.f32.mrb[31].mxu0  ;;  %v1937_v39 = vpop.f32.mrb[31].mxu1 }
 0x988   : > { %v2265_v40 = vmul.f32 -1.442695, %v1940_v34  ;;  %v2266_v44 = vmul.f32 -1.442695, %v1942_v42 }
 0x989   : > { %2607 = vpow2.f32 %v2264_v37 }
 0x98a   : > { %2609 = vpow2.f32 %v2265_v40 }
 0x98b   : > { %2611 = vpow2.f32 %v2266_v44 }
 0x98c   : > { %2613 = vtanh.f32 %v1941_v45 }
 0x993   : > { %v2608_v46 = vpop.eup %2607 }
 0x994   : > { %v2610_v47 = vpop.eup %2609  ;;  %v1946_v48 = vadd.f32 1.0, %v2608_v46 }
 0x995   : > { %v1952_v49 = vadd.f32 1.0, %v2610_v47  ;;  %v2612_v50 = vpop.eup %2611 }
 0x996   : > { %2615 = vrcp.f32 %v1946_v48  ;;  %v2614_v51 = vpop.eup %2613  ;;  %v1959_v55 = vadd.f32 1.0, %v2612_v50 }
 0x997   : > { %2617 = vrcp.f32 %v1952_v49 }
 0x998   : > { %2619 = vrcp.f32 %v1959_v55 }
 0x9a0   : > { %v2616_v52 = vpop.eup %2615 }
 0x9a1   : > { %v2618_v53 = vpop.eup %2617  ;;  %v1963_v54 = vmul.f32 %v2616_v52, %v2614_v51 }
 0x9a2   : > { %v1962_v56 = vmul.f32 %v2618_v53, %v3538_v15  ;;  %v2620_v12 = vpop.eup %2619 }
 0x9a4   : > { %v1964_v61 = vadd.f32 %v1963_v54, %v1962_v56 }
 0x9a6   : > { %2621 = vtanh.f32 %v1964_v61 }
 0x9b0   : > { %v2622_v14 = vpop.eup %2621 }
 0x9b1   : > { %v1966_v16 = vmul.f32 %v2622_v14, %v2620_v12 }
 0x9b3   : > { %1968 = vst [vmem:[#allocation3 + $0x38] sm:$0xff] %v1966_v16  ;;  %2322 = vmatmul.mubr.f32.vlgmr.msra.gmra.mrb[32].mxu0 %v1966_v16 }
 0xa86   : > { %v2058_v18 = vpop.f32.mrb[32].mxu0 }
 0xa87   : > { %v2059_v19 = vadd.f32 %v2267_v17, %v2058_v18  ;;  %v2323_v24 = vpop.f32.mrb[33].mxu0 }
 0xa89   : > { %2062 = vst [vmem:[%s2963_s8] sm:$0xff] %v2059_v19 }
 0xa8a PF: > { %p19_p6 = scmp.ge.s32.totalorder %s2821_s26, 4   ;;  %s3620_s21 = smov %s2745_s22 }
 0xa8b   : > { %s3621_s22 = smov %s2749_s23  ;;  %s3622_s23 = smov %s2831_s29 }
 0xa8c   : > { %s3623_s24 = smov %s2821_s26  ;;  %21 = sbr.rel (!%p19_p6) target bundleno = 5 (0x5), region = 122 }
 0xa93   :  { %2082 = vsyncpa [#allocation5], 1 }
 0xa94   :  { %2084 = vsyncpa [#allocation5 + $0x1], 1 }
 0xa95   :  { %2085 = vsyncpa [#allocation7], 1 }
 0xa96   :  { %2087 = vsyncpa [#allocation7 + $0x1], 1 }

</bundles_post_ra>
